<compile_context>
chip_gen: v7x
topology: tpu7x:2x2x1
jax: 0.10.0
libtpu: 0.0.40
codegen_flags: <defaults>
</compile_context>

<pallas_src>
import functools
import math

import jax
import jax.numpy as jnp
from jax import lax
from jax.experimental import pallas as pl
from jax.experimental.pallas import tpu as pltpu


# ----------------------------- fused kernel --------------------------------

def _decoder_layer_kernel(tgt_ref, mem_ref,
                          sa_w_ref, sa_b_ref, sa_ow_ref, sa_ob_ref,
                          ca_wq_ref, ca_bq_ref, ca_wkv_ref, ca_bkv_ref,
                          ca_ow_ref, ca_ob_ref,
                          w1_ref, b1_ref, w2_ref, b2_ref,
                          o_ref, *, n_heads, num_ffn):
    f32 = jnp.float32
    cdt = jnp.bfloat16                       # MXU operand dtype (f32 accumulate)

    x = tgt_ref[0]                           # (L, E) f32 residual stream
    mem = mem_ref[0]                         # (S, E) f32
    E = x.shape[1]
    Dh = E // n_heads

    def mm(a, w):
        # a: (M, K) f32, w: (K, N) bf16  ->  (M, N) f32 (MXU, f32 accumulation)
        return lax.dot_general(a.astype(cdt), w, (((1,), (0,)), ((), ())),
                               preferred_element_type=f32)

    def split_heads(t):                      # (T, E) -> (H, T, Dh)
        return t.reshape(t.shape[0], n_heads, Dh).transpose(1, 0, 2)

    def attention(q, k, v):
        # q: (Lq, E), k/v: (Lk, E), all f32; 1/sqrt(Dh) already folded into q.
        qh = split_heads(q).astype(cdt)
        kh = split_heads(k).astype(cdt)
        vh = split_heads(v).astype(cdt)
        s = jnp.einsum("hqd,hkd->hqk", qh, kh,
                       preferred_element_type=f32)           # (H, Lq, Lk) f32
        m = jnp.max(s, axis=-1, keepdims=True)
        p = jnp.exp(s - m)
        denom = jnp.sum(p, axis=-1, keepdims=True)
        p = p * pl.reciprocal(denom, approx=True)            # EUP slot
        o = jnp.einsum("hqk,hkd->hqd", p.astype(cdt), vh,
                       preferred_element_type=f32)           # (H, Lq, Dh)
        return o.transpose(1, 0, 2).reshape(q.shape[0], E)   # (Lq, E) f32

    # ---- self-attention (combined QKV projection) + fused residual ----
    qkv = mm(x, sa_w_ref[...]) + sa_b_ref[...]               # (L, 3E)
    attn = attention(qkv[:, :E], qkv[:, E:2 * E], qkv[:, 2 * E:])
    x = x + mm(attn, sa_ow_ref[...]) + sa_ob_ref[...]

    # ---- cross-attention (q from x, combined kv from memory) + residual ----
    q = mm(x, ca_wq_ref[...]) + ca_bq_ref[...]               # (L, E)
    kv = mm(mem, ca_wkv_ref[...]) + ca_bkv_ref[...]          # (S, 2E)
    attn = attention(q, kv[:, :E], kv[:, E:])
    x = x + mm(attn, ca_ow_ref[...]) + ca_ob_ref[...]

    # ---- FFN stack, resident in VMEM, fused residuals ----
    # TODO(synk): at production sizes pad E / dff to multiples of 128 so every
    # matmul output / qkv split is lane-dense (unmasked vst).
    for i in range(num_ffn):                                  # static unroll
        h = mm(x, w1_ref[i]) + b1_ref[i]
        h = jnp.maximum(h, 0.01 * h)                          # LeakyReLU(0.01)
        x = x + mm(h, w2_ref[i]) + b2_ref[i]

    o_ref[0] = x.astype(o_ref.dtype)


# ----------------------------- wrapper --------------------------------------

def transformer_decoder_layer(tgt, memory, params, nhead):
    """Fused forward pass; tgt (L,N,E), memory (S,N,E) -> (L,N,E)."""
    L, N, E = tgt.shape
    S = memory.shape[0]
    Dh = E // nhead
    num_ffn = len(params["ffn"])
    dff = params["ffn"][0]["w1"].shape[0]
    cdt = jnp.bfloat16
    scale = 1.0 / math.sqrt(Dh)

    # ---- one-time layout plumbing (outside the kernel) ----
    q_scale = jnp.concatenate([jnp.full((E,), scale, jnp.float32),
                               jnp.ones((2 * E,), jnp.float32)])
    sa = params["self_attn"]
    sa_w_t = (sa["in_proj_weight"].T * q_scale[None, :]).astype(cdt)     # (E, 3E)
    sa_b = (sa["in_proj_bias"] * q_scale).reshape(1, 3 * E)
    sa_ow_t = sa["out_proj_weight"].T.astype(cdt)                        # (E, E)
    sa_ob = sa["out_proj_bias"].reshape(1, E)

    ca = params["multihead_attn"]
    ca_wq_t = (ca["in_proj_weight"][:E].T * scale).astype(cdt)           # (E, E)
    ca_bq = (ca["in_proj_bias"][:E] * scale).reshape(1, E)
    ca_wkv_t = ca["in_proj_weight"][E:].T.astype(cdt)                    # (E, 2E)
    ca_bkv = ca["in_proj_bias"][E:].reshape(1, 2 * E)
    ca_ow_t = ca["out_proj_weight"].T.astype(cdt)                        # (E, E)
    ca_ob = ca["out_proj_bias"].reshape(1, E)

    w1_t = jnp.stack([f["w1"].T for f in params["ffn"]]).astype(cdt)     # (F, E, dff)
    b1 = jnp.stack([f["b1"].reshape(1, dff) for f in params["ffn"]])     # (F, 1, dff)
    w2_t = jnp.stack([f["w2"].T for f in params["ffn"]]).astype(cdt)     # (F, dff, E)
    b2 = jnp.stack([f["b2"].reshape(1, E) for f in params["ffn"]])       # (F, 1, E)

    # batch-major activations so each grid step is a clean per-batch block
    tgt_b = tgt.transpose(1, 0, 2)       # (N, L, E)
    mem_b = memory.transpose(1, 0, 2)    # (N, S, E)

    flops = int(N * (
        2 * L * E * 3 * E              # self-attn QKV projection
        + 4 * L * L * E                # self-attn scores + PV
        + 2 * L * E * E                # self-attn out-proj
        + 2 * L * E * E                # cross-attn q projection
        + 2 * S * E * 2 * E            # cross-attn kv projection
        + 4 * L * S * E                # cross-attn scores + PV
        + 2 * L * E * E                # cross-attn out-proj
        + num_ffn * 4 * L * E * dff))  # FFN stack
    transcendentals = int(N * nhead * L * (L + S))
    bytes_accessed = int(
        4 * N * (2 * L * E + S * E)                            # f32 activations in/out
        + 2 * (3 * E * E + E * E + E * E + 2 * E * E + E * E
               + num_ffn * 2 * E * dff)                        # bf16 weights
        + 4 * (3 * E + 4 * E + num_ffn * (dff + E)))           # f32 biases

    def resident(arr):
        zeros = (0,) * arr.ndim
        return pl.BlockSpec(arr.shape, lambda b, z=zeros: z)   # VMEM-resident

    weights = (sa_w_t, sa_b, sa_ow_t, sa_ob,
               ca_wq_t, ca_bq, ca_wkv_t, ca_bkv, ca_ow_t, ca_ob,
               w1_t, b1, w2_t, b2)

    out = pl.pallas_call(
        functools.partial(_decoder_layer_kernel, n_heads=nhead, num_ffn=num_ffn),
        out_shape=jax.ShapeDtypeStruct((N, L, E), tgt.dtype),
        grid=(N,),
        in_specs=[pl.BlockSpec((1, L, E), lambda b: (b, 0, 0)),
                  pl.BlockSpec((1, S, E), lambda b: (b, 0, 0)),
                  *[resident(w) for w in weights]],
        out_specs=pl.BlockSpec((1, L, E), lambda b: (b, 0, 0)),
        compiler_params=pltpu.CompilerParams(
            dimension_semantics=("parallel",)),
        cost_estimate=pl.CostEstimate(flops=flops,
                                      transcendentals=transcendentals,
                                      bytes_accessed=bytes_accessed),
    )(tgt_b, mem_b, *weights)

    # TODO(synk): at production L (long sequences) add an L-tile grid axis
    # ("parallel") plus an innermost KV-block axis ("arbitrary") with
    # flash-style online softmax, sized against per-generation VMEM
    # (64 MiB v7x / 128 MiB v5e-v6e).
    return out.transpose(1, 0, 2)        # back to (L, N, E)


# ----------------------------- pure-JAX reference ---------------------------

def reference_decoder_layer(tgt, memory, params, nhead):
    L, N, E = tgt.shape
    Dh = E // nhead

    def mha(q_in, k_in, v_in, p):
        Lq, Skv = q_in.shape[0], k_in.shape[0]
        wq, wk, wv = jnp.split(p["in_proj_weight"], 3, axis=0)
        bq, bk, bv = jnp.split(p["in_proj_bias"], 3, axis=0)
        q = (q_in @ wq.T + bq).reshape(Lq, N * nhead, Dh).transpose(1, 0, 2)
        k = (k_in @ wk.T + bk).reshape(Skv, N * nhead, Dh).transpose(1, 0, 2)
        v = (v_in @ wv.T + bv).reshape(Skv, N * nhead, Dh).transpose(1, 0, 2)
        s = jnp.einsum("bld,bsd->bls", q / math.sqrt(Dh), k)
        a = jax.nn.softmax(s, axis=-1)
        o = jnp.einsum("bls,bsd->bld", a, v).transpose(1, 0, 2).reshape(Lq * N, E)
        return (o @ p["out_proj_weight"].T + p["out_proj_bias"]).reshape(Lq, N, E)

    x = tgt + mha(tgt, tgt, tgt, params["self_attn"])
    x = x + mha(x, memory, memory, params["multihead_attn"])
    xf = x.reshape(L * N, E)
    for f in params["ffn"]:
        h = xf @ f["w1"].T + f["b1"]
        h = jnp.where(h >= 0, h, 0.01 * h)
        xf = xf + h @ f["w2"].T + f["b2"]
    return xf.reshape(L, N, E)


# ----------------------------- param init -----------------------------------

def make_params(key, d_model, nhead, dim_feedforward, num_ffn_layers):
    def nrm(k, shape, scale=0.1):
        return scale * jax.random.normal(k, shape, dtype=jnp.float32)

    k_sa, k_ca, k_ffn = jax.random.split(key, 3)

    def attn_params(k):
        ks = jax.random.split(k, 4)
        return {
            "in_proj_weight": nrm(ks[0], (3 * d_model, d_model)),
            "in_proj_bias": nrm(ks[1], (3 * d_model,)),
            "out_proj_weight": nrm(ks[2], (d_model, d_model)),
            "out_proj_bias": nrm(ks[3], (d_model,)),
        }

    ffn = []
    ks = jax.random.split(k_ffn, 4 * num_ffn_layers)
    for i in range(num_ffn_layers):
        k0, k1, k2, k3 = ks[4 * i:4 * i + 4]
        ffn.append({
            "w1": nrm(k0, (dim_feedforward, d_model)),
            "b1": nrm(k1, (dim_feedforward,)),
            "w2": nrm(k2, (d_model, dim_feedforward)),
            "b2": nrm(k3, (d_model,)),
        })

    return {"self_attn": attn_params(k_sa),
            "multihead_attn": attn_params(k_ca),
            "ffn": ffn}


# ----------------------------- main ------------------------------------------

if __name__ == "__main__":
    d_model = 32
    nhead = 4
    dim_feedforward = 16
    num_ffn_layers = 2
    L = 8   # target sequence length
    S = 8   # memory sequence length
    N = 2   # batch

    key = jax.random.PRNGKey(0)
    k_tgt, k_mem, k_par = jax.random.split(key, 3)

    tgt = jax.random.normal(k_tgt, (L, N, d_model), dtype=jnp.float32)
    memory = jax.random.normal(k_mem, (S, N, d_model), dtype=jnp.float32)
    params = make_params(k_par, d_model, nhead, dim_feedforward, num_ffn_layers)

    fwd = jax.jit(transformer_decoder_layer, static_argnums=(3,))
    out = jax.block_until_ready(fwd(tgt, memory, params, nhead))

    ref = reference_decoder_layer(tgt, memory, params, nhead)

    assert out.shape == (L, N, d_model)
    assert bool(jnp.all(jnp.isfinite(out)))
    # bf16 MXU operands + approx softmax reciprocal vs f32 reference -> loose check.
    assert bool(jnp.allclose(out, ref, atol=5e-2, rtol=5e-2))
    print("KERNEL_OK")
</pallas_src>

<mosaic_0001>
module attributes {stable_mosaic.version = 11 : i64} {
  func.func @_decoder_layer_kernel(%arg0: i32, %arg1: memref<1x8x32xf32, #tpu.memory_space<vmem>>, %arg2: memref<1x8x32xf32, #tpu.memory_space<vmem>>, %arg3: memref<32x96xbf16, #tpu.memory_space<vmem>>, %arg4: memref<1x96xf32, #tpu.memory_space<vmem>>, %arg5: memref<32x32xbf16, #tpu.memory_space<vmem>>, %arg6: memref<1x32xf32, #tpu.memory_space<vmem>>, %arg7: memref<32x32xbf16, #tpu.memory_space<vmem>>, %arg8: memref<1x32xf32, #tpu.memory_space<vmem>>, %arg9: memref<32x64xbf16, #tpu.memory_space<vmem>>, %arg10: memref<1x64xf32, #tpu.memory_space<vmem>>, %arg11: memref<32x32xbf16, #tpu.memory_space<vmem>>, %arg12: memref<1x32xf32, #tpu.memory_space<vmem>>, %arg13: memref<2x32x16xbf16, #tpu.memory_space<vmem>>, %arg14: memref<2x1x16xf32, #tpu.memory_space<vmem>>, %arg15: memref<2x16x32xbf16, #tpu.memory_space<vmem>>, %arg16: memref<2x1x32xf32, #tpu.memory_space<vmem>>, %arg17: memref<1x8x32xf32, #tpu.memory_space<vmem>>) attributes {dimension_semantics = [#tpu.dimension_semantics<parallel>], iteration_bounds = array<i64: 2>, scalar_prefetch = 0 : i64, scratch_operands = 0 : i64, tpu.core_type = #tpu.core_type<tc>, window_params = [{transform_indices = @transform_0, window_bounds = array<i64: 1, 8, 32>}, {transform_indices = @transform_1, window_bounds = array<i64: 1, 8, 32>}, {pipeline_mode = #tpu.pipeline_mode<synchronous>, transform_indices = @transform_2, window_bounds = array<i64: 32, 96>}, {pipeline_mode = #tpu.pipeline_mode<synchronous>, transform_indices = @transform_3, window_bounds = array<i64: 1, 96>}, {pipeline_mode = #tpu.pipeline_mode<synchronous>, transform_indices = @transform_4, window_bounds = array<i64: 32, 32>}, {pipeline_mode = #tpu.pipeline_mode<synchronous>, transform_indices = @transform_5, window_bounds = array<i64: 1, 32>}, {pipeline_mode = #tpu.pipeline_mode<synchronous>, transform_indices = @transform_6, window_bounds = array<i64: 32, 32>}, {pipeline_mode = #tpu.pipeline_mode<synchronous>, transform_indices = @transform_7, window_bounds = array<i64: 1, 32>}, {pipeline_mode = #tpu.pipeline_mode<synchronous>, transform_indices = @transform_8, window_bounds = array<i64: 32, 64>}, {pipeline_mode = #tpu.pipeline_mode<synchronous>, transform_indices = @transform_9, window_bounds = array<i64: 1, 64>}, {pipeline_mode = #tpu.pipeline_mode<synchronous>, transform_indices = @transform_10, window_bounds = array<i64: 32, 32>}, {pipeline_mode = #tpu.pipeline_mode<synchronous>, transform_indices = @transform_11, window_bounds = array<i64: 1, 32>}, {pipeline_mode = #tpu.pipeline_mode<synchronous>, transform_indices = @transform_12, window_bounds = array<i64: 2, 32, 16>}, {pipeline_mode = #tpu.pipeline_mode<synchronous>, transform_indices = @transform_13, window_bounds = array<i64: 2, 1, 16>}, {pipeline_mode = #tpu.pipeline_mode<synchronous>, transform_indices = @transform_14, window_bounds = array<i64: 2, 16, 32>}, {pipeline_mode = #tpu.pipeline_mode<synchronous>, transform_indices = @transform_15, window_bounds = array<i64: 2, 1, 32>}, {transform_indices = @transform_16, window_bounds = array<i64: 1, 8, 32>}]} {
    %c0 = arith.constant 0 : index
    %c0_0 = arith.constant 0 : index
    %c0_1 = arith.constant 0 : index
    %0 = vector.load %arg1[%c0, %c0_0, %c0_1] : memref<1x8x32xf32, #tpu.memory_space<vmem>>, vector<1x8x32xf32>
    %1 = vector.shape_cast %0 : vector<1x8x32xf32> to vector<8x32xf32>
    %c0_2 = arith.constant 0 : index
    %c0_3 = arith.constant 0 : index
    %c0_4 = arith.constant 0 : index
    %2 = vector.load %arg2[%c0_2, %c0_3, %c0_4] : memref<1x8x32xf32, #tpu.memory_space<vmem>>, vector<1x8x32xf32>
    %3 = vector.shape_cast %2 : vector<1x8x32xf32> to vector<8x32xf32>
    %c0_5 = arith.constant 0 : index
    %c0_6 = arith.constant 0 : index
    %4 = vector.load %arg3[%c0_5, %c0_6] : memref<32x96xbf16, #tpu.memory_space<vmem>>, vector<32x96xbf16>
    %5 = arith.truncf %1 : vector<8x32xf32> to vector<8x32xbf16>
    %cst = arith.constant dense<0.000000e+00> : vector<8x96xf32>
    %6 = tpu.matmul %5, %4, %cst {dimension_numbers = #tpu.dot_dimension_numbers<[1], [0], [0], [1], [0, 0, 1, 1], [], []>} : vector<8x32xbf16>, vector<32x96xbf16>, vector<8x96xf32> -> vector<8x96xf32>
    %c0_7 = arith.constant 0 : index
    %c0_8 = arith.constant 0 : index
    %7 = vector.load %arg4[%c0_7, %c0_8] : memref<1x96xf32, #tpu.memory_space<vmem>>, vector<1x96xf32>
    %8 = vector.broadcast %7 : vector<1x96xf32> to vector<8x96xf32>
    %9 = arith.addf %6, %8 : vector<8x96xf32>
    %10 = vector.extract_strided_slice %9 {offsets = [0, 0], sizes = [8, 32], strides = [1, 1]} : vector<8x96xf32> to vector<8x32xf32>
    %11 = vector.extract_strided_slice %9 {offsets = [0, 32], sizes = [8, 32], strides = [1, 1]} : vector<8x96xf32> to vector<8x32xf32>
    %12 = vector.extract_strided_slice %9 {offsets = [0, 64], sizes = [8, 32], strides = [1, 1]} : vector<8x96xf32> to vector<8x32xf32>
    %13 = vector.shape_cast %10 : vector<8x32xf32> to vector<8x4x8xf32>
    %14 = tpu.transpose %13, [1, 0, 2] : vector<8x4x8xf32> -> vector<4x8x8xf32>
    %15 = arith.truncf %14 : vector<4x8x8xf32> to vector<4x8x8xbf16>
    %16 = vector.shape_cast %11 : vector<8x32xf32> to vector<8x4x8xf32>
    %17 = tpu.transpose %16, [1, 0, 2] : vector<8x4x8xf32> -> vector<4x8x8xf32>
    %18 = arith.truncf %17 : vector<4x8x8xf32> to vector<4x8x8xbf16>
    %19 = vector.shape_cast %12 : vector<8x32xf32> to vector<8x4x8xf32>
    %20 = tpu.transpose %19, [1, 0, 2] : vector<8x4x8xf32> -> vector<4x8x8xf32>
    %21 = arith.truncf %20 : vector<4x8x8xf32> to vector<4x8x8xbf16>
    "tpu.trace_start"() <{level = 10 : i32, message = "hqd,hkd->hqk"}> : () -> ()
    %cst_9 = arith.constant dense<0.000000e+00> : vector<4x8x8xf32>
    %22 = tpu.matmul %15, %18, %cst_9 {dimension_numbers = #tpu.dot_dimension_numbers<[2], [2], [1], [1], [0, 0, 0, 1, 1, 1], [0], [0]>} : vector<4x8x8xbf16>, vector<4x8x8xbf16>, vector<4x8x8xf32> -> vector<4x8x8xf32>
    "tpu.trace_stop"() : () -> ()
    %cst_10 = arith.constant dense<0xFF800000> : vector<4x8xf32>
    %23 = vector.multi_reduction <maximumf>, %22, %cst_10 [2] : vector<4x8x8xf32> to vector<4x8xf32>
    %24 = vector.shape_cast %23 : vector<4x8xf32> to vector<4x8x1xf32>
    %25 = vector.broadcast %24 : vector<4x8x1xf32> to vector<4x8x8xf32>
    %26 = arith.subf %22, %25 : vector<4x8x8xf32>
    %27 = math.exp %26 : vector<4x8x8xf32>
    %cst_11 = arith.constant dense<0.000000e+00> : vector<4x8xf32>
    %28 = vector.multi_reduction <add>, %27, %cst_11 [2] : vector<4x8x8xf32> to vector<4x8xf32>
    %29 = vector.shape_cast %28 : vector<4x8xf32> to vector<4x8x1xf32>
    %30 = tpu.reciprocal %29 {approx = true} : vector<4x8x1xf32> -> vector<4x8x1xf32>
    %31 = vector.broadcast %30 : vector<4x8x1xf32> to vector<4x8x8xf32>
    %32 = arith.mulf %27, %31 : vector<4x8x8xf32>
    %33 = arith.truncf %32 : vector<4x8x8xf32> to vector<4x8x8xbf16>
    "tpu.trace_start"() <{level = 10 : i32, message = "hqk,hkd->hqd"}> : () -> ()
    %cst_12 = arith.constant dense<0.000000e+00> : vector<4x8x8xf32>
    %34 = tpu.matmul %33, %21, %cst_12 {dimension_numbers = #tpu.dot_dimension_numbers<[2], [1], [1], [2], [0, 0, 0, 1, 1, 2], [0], [0]>} : vector<4x8x8xbf16>, vector<4x8x8xbf16>, vector<4x8x8xf32> -> vector<4x8x8xf32>
    "tpu.trace_stop"() : () -> ()
    %35 = tpu.transpose %34, [1, 0, 2] : vector<4x8x8xf32> -> vector<8x4x8xf32>
    %36 = vector.shape_cast %35 : vector<8x4x8xf32> to vector<8x32xf32>
    %c0_13 = arith.constant 0 : index
    %c0_14 = arith.constant 0 : index
    %37 = vector.load %arg5[%c0_13, %c0_14] : memref<32x32xbf16, #tpu.memory_space<vmem>>, vector<32x32xbf16>
    %38 = arith.truncf %36 : vector<8x32xf32> to vector<8x32xbf16>
    %cst_15 = arith.constant dense<0.000000e+00> : vector<8x32xf32>
    %39 = tpu.matmul %38, %37, %cst_15 {dimension_numbers = #tpu.dot_dimension_numbers<[1], [0], [0], [1], [0, 0, 1, 1], [], []>} : vector<8x32xbf16>, vector<32x32xbf16>, vector<8x32xf32> -> vector<8x32xf32>
    %40 = arith.addf %1, %39 : vector<8x32xf32>
    %c0_16 = arith.constant 0 : index
    %c0_17 = arith.constant 0 : index
    %41 = vector.load %arg6[%c0_16, %c0_17] : memref<1x32xf32, #tpu.memory_space<vmem>>, vector<1x32xf32>
    %42 = vector.broadcast %41 : vector<1x32xf32> to vector<8x32xf32>
    %43 = arith.addf %40, %42 : vector<8x32xf32>
    %c0_18 = arith.constant 0 : index
    %c0_19 = arith.constant 0 : index
    %44 = vector.load %arg7[%c0_18, %c0_19] : memref<32x32xbf16, #tpu.memory_space<vmem>>, vector<32x32xbf16>
    %45 = arith.truncf %43 : vector<8x32xf32> to vector<8x32xbf16>
    %cst_20 = arith.constant dense<0.000000e+00> : vector<8x32xf32>
    %46 = tpu.matmul %45, %44, %cst_20 {dimension_numbers = #tpu.dot_dimension_numbers<[1], [0], [0], [1], [0, 0, 1, 1], [], []>} : vector<8x32xbf16>, vector<32x32xbf16>, vector<8x32xf32> -> vector<8x32xf32>
    %c0_21 = arith.constant 0 : index
    %c0_22 = arith.constant 0 : index
    %47 = vector.load %arg8[%c0_21, %c0_22] : memref<1x32xf32, #tpu.memory_space<vmem>>, vector<1x32xf32>
    %48 = vector.broadcast %47 : vector<1x32xf32> to vector<8x32xf32>
    %49 = arith.addf %46, %48 : vector<8x32xf32>
    %c0_23 = arith.constant 0 : index
    %c0_24 = arith.constant 0 : index
    %50 = vector.load %arg9[%c0_23, %c0_24] : memref<32x64xbf16, #tpu.memory_space<vmem>>, vector<32x64xbf16>
    %51 = arith.truncf %3 : vector<8x32xf32> to vector<8x32xbf16>
    %cst_25 = arith.constant dense<0.000000e+00> : vector<8x64xf32>
    %52 = tpu.matmul %51, %50, %cst_25 {dimension_numbers = #tpu.dot_dimension_numbers<[1], [0], [0], [1], [0, 0, 1, 1], [], []>} : vector<8x32xbf16>, vector<32x64xbf16>, vector<8x64xf32> -> vector<8x64xf32>
    %c0_26 = arith.constant 0 : index
    %c0_27 = arith.constant 0 : index
    %53 = vector.load %arg10[%c0_26, %c0_27] : memref<1x64xf32, #tpu.memory_space<vmem>>, vector<1x64xf32>
    %54 = vector.broadcast %53 : vector<1x64xf32> to vector<8x64xf32>
    %55 = arith.addf %52, %54 : vector<8x64xf32>
    %56 = vector.extract_strided_slice %55 {offsets = [0, 0], sizes = [8, 32], strides = [1, 1]} : vector<8x64xf32> to vector<8x32xf32>
    %57 = vector.extract_strided_slice %55 {offsets = [0, 32], sizes = [8, 32], strides = [1, 1]} : vector<8x64xf32> to vector<8x32xf32>
    %58 = vector.shape_cast %49 : vector<8x32xf32> to vector<8x4x8xf32>
    %59 = tpu.transpose %58, [1, 0, 2] : vector<8x4x8xf32> -> vector<4x8x8xf32>
    %60 = arith.truncf %59 : vector<4x8x8xf32> to vector<4x8x8xbf16>
    %61 = vector.shape_cast %56 : vector<8x32xf32> to vector<8x4x8xf32>
    %62 = tpu.transpose %61, [1, 0, 2] : vector<8x4x8xf32> -> vector<4x8x8xf32>
    %63 = arith.truncf %62 : vector<4x8x8xf32> to vector<4x8x8xbf16>
    %64 = vector.shape_cast %57 : vector<8x32xf32> to vector<8x4x8xf32>
    %65 = tpu.transpose %64, [1, 0, 2] : vector<8x4x8xf32> -> vector<4x8x8xf32>
    %66 = arith.truncf %65 : vector<4x8x8xf32> to vector<4x8x8xbf16>
    "tpu.trace_start"() <{level = 10 : i32, message = "hqd,hkd->hqk"}> : () -> ()
    %cst_28 = arith.constant dense<0.000000e+00> : vector<4x8x8xf32>
    %67 = tpu.matmul %60, %63, %cst_28 {dimension_numbers = #tpu.dot_dimension_numbers<[2], [2], [1], [1], [0, 0, 0, 1, 1, 1], [0], [0]>} : vector<4x8x8xbf16>, vector<4x8x8xbf16>, vector<4x8x8xf32> -> vector<4x8x8xf32>
    "tpu.trace_stop"() : () -> ()
    %cst_29 = arith.constant dense<0xFF800000> : vector<4x8xf32>
    %68 = vector.multi_reduction <maximumf>, %67, %cst_29 [2] : vector<4x8x8xf32> to vector<4x8xf32>
    %69 = vector.shape_cast %68 : vector<4x8xf32> to vector<4x8x1xf32>
    %70 = vector.broadcast %69 : vector<4x8x1xf32> to vector<4x8x8xf32>
    %71 = arith.subf %67, %70 : vector<4x8x8xf32>
    %72 = math.exp %71 : vector<4x8x8xf32>
    %cst_30 = arith.constant dense<0.000000e+00> : vector<4x8xf32>
    %73 = vector.multi_reduction <add>, %72, %cst_30 [2] : vector<4x8x8xf32> to vector<4x8xf32>
    %74 = vector.shape_cast %73 : vector<4x8xf32> to vector<4x8x1xf32>
    %75 = tpu.reciprocal %74 {approx = true} : vector<4x8x1xf32> -> vector<4x8x1xf32>
    %76 = vector.broadcast %75 : vector<4x8x1xf32> to vector<4x8x8xf32>
    %77 = arith.mulf %72, %76 : vector<4x8x8xf32>
    %78 = arith.truncf %77 : vector<4x8x8xf32> to vector<4x8x8xbf16>
    "tpu.trace_start"() <{level = 10 : i32, message = "hqk,hkd->hqd"}> : () -> ()
    %cst_31 = arith.constant dense<0.000000e+00> : vector<4x8x8xf32>
    %79 = tpu.matmul %78, %66, %cst_31 {dimension_numbers = #tpu.dot_dimension_numbers<[2], [1], [1], [2], [0, 0, 0, 1, 1, 2], [0], [0]>} : vector<4x8x8xbf16>, vector<4x8x8xbf16>, vector<4x8x8xf32> -> vector<4x8x8xf32>
    "tpu.trace_stop"() : () -> ()
    %80 = tpu.transpose %79, [1, 0, 2] : vector<4x8x8xf32> -> vector<8x4x8xf32>
    %81 = vector.shape_cast %80 : vector<8x4x8xf32> to vector<8x32xf32>
    %c0_32 = arith.constant 0 : index
    %c0_33 = arith.constant 0 : index
    %82 = vector.load %arg11[%c0_32, %c0_33] : memref<32x32xbf16, #tpu.memory_space<vmem>>, vector<32x32xbf16>
    %83 = arith.truncf %81 : vector<8x32xf32> to vector<8x32xbf16>
    %cst_34 = arith.constant dense<0.000000e+00> : vector<8x32xf32>
    %84 = tpu.matmul %83, %82, %cst_34 {dimension_numbers = #tpu.dot_dimension_numbers<[1], [0], [0], [1], [0, 0, 1, 1], [], []>} : vector<8x32xbf16>, vector<32x32xbf16>, vector<8x32xf32> -> vector<8x32xf32>
    %85 = arith.addf %43, %84 : vector<8x32xf32>
    %c0_35 = arith.constant 0 : index
    %c0_36 = arith.constant 0 : index
    %86 = vector.load %arg12[%c0_35, %c0_36] : memref<1x32xf32, #tpu.memory_space<vmem>>, vector<1x32xf32>
    %87 = vector.broadcast %86 : vector<1x32xf32> to vector<8x32xf32>
    %88 = arith.addf %85, %87 : vector<8x32xf32>
    %c0_37 = arith.constant 0 : index
    %c0_38 = arith.constant 0 : index
    %c0_39 = arith.constant 0 : index
    %89 = vector.load %arg13[%c0_37, %c0_38, %c0_39] : memref<2x32x16xbf16, #tpu.memory_space<vmem>>, vector<1x32x16xbf16>
    %90 = vector.shape_cast %89 : vector<1x32x16xbf16> to vector<32x16xbf16>
    %91 = arith.truncf %88 : vector<8x32xf32> to vector<8x32xbf16>
    %cst_40 = arith.constant dense<0.000000e+00> : vector<8x16xf32>
    %92 = tpu.matmul %91, %90, %cst_40 {dimension_numbers = #tpu.dot_dimension_numbers<[1], [0], [0], [1], [0, 0, 1, 1], [], []>} : vector<8x32xbf16>, vector<32x16xbf16>, vector<8x16xf32> -> vector<8x16xf32>
    %c0_41 = arith.constant 0 : index
    %c0_42 = arith.constant 0 : index
    %c0_43 = arith.constant 0 : index
    %93 = vector.load %arg14[%c0_41, %c0_42, %c0_43] : memref<2x1x16xf32, #tpu.memory_space<vmem>>, vector<1x1x16xf32>
    %94 = vector.shape_cast %93 : vector<1x1x16xf32> to vector<1x16xf32>
    %95 = vector.broadcast %94 : vector<1x16xf32> to vector<8x16xf32>
    %96 = arith.addf %92, %95 : vector<8x16xf32>
    %cst_44 = arith.constant 0.00999999977 : f32
    %97 = vector.broadcast %cst_44 : f32 to vector<8x16xf32>
    %98 = arith.mulf %97, %96 : vector<8x16xf32>
    %99 = arith.maximumf %96, %98 : vector<8x16xf32>
    %c0_45 = arith.constant 0 : index
    %c0_46 = arith.constant 0 : index
    %c0_47 = arith.constant 0 : index
    %100 = vector.load %arg15[%c0_45, %c0_46, %c0_47] : memref<2x16x32xbf16, #tpu.memory_space<vmem>>, vector<1x16x32xbf16>
    %101 = vector.shape_cast %100 : vector<1x16x32xbf16> to vector<16x32xbf16>
    %102 = arith.truncf %99 : vector<8x16xf32> to vector<8x16xbf16>
    %cst_48 = arith.constant dense<0.000000e+00> : vector<8x32xf32>
    %103 = tpu.matmul %102, %101, %cst_48 {dimension_numbers = #tpu.dot_dimension_numbers<[1], [0], [0], [1], [0, 0, 1, 1], [], []>} : vector<8x16xbf16>, vector<16x32xbf16>, vector<8x32xf32> -> vector<8x32xf32>
    %104 = arith.addf %88, %103 : vector<8x32xf32>
    %c0_49 = arith.constant 0 : index
    %c0_50 = arith.constant 0 : index
    %c0_51 = arith.constant 0 : index
    %105 = vector.load %arg16[%c0_49, %c0_50, %c0_51] : memref<2x1x32xf32, #tpu.memory_space<vmem>>, vector<1x1x32xf32>
    %106 = vector.shape_cast %105 : vector<1x1x32xf32> to vector<1x32xf32>
    %107 = vector.broadcast %106 : vector<1x32xf32> to vector<8x32xf32>
    %108 = arith.addf %104, %107 : vector<8x32xf32>
    %c1 = arith.constant 1 : index
    %c0_52 = arith.constant 0 : index
    %c0_53 = arith.constant 0 : index
    %109 = vector.load %arg13[%c1, %c0_52, %c0_53] : memref<2x32x16xbf16, #tpu.memory_space<vmem>>, vector<1x32x16xbf16>
    %110 = vector.shape_cast %109 : vector<1x32x16xbf16> to vector<32x16xbf16>
    %111 = arith.truncf %108 : vector<8x32xf32> to vector<8x32xbf16>
    %cst_54 = arith.constant dense<0.000000e+00> : vector<8x16xf32>
    %112 = tpu.matmul %111, %110, %cst_54 {dimension_numbers = #tpu.dot_dimension_numbers<[1], [0], [0], [1], [0, 0, 1, 1], [], []>} : vector<8x32xbf16>, vector<32x16xbf16>, vector<8x16xf32> -> vector<8x16xf32>
    %c1_55 = arith.constant 1 : index
    %c0_56 = arith.constant 0 : index
    %c0_57 = arith.constant 0 : index
    %113 = vector.load %arg14[%c1_55, %c0_56, %c0_57] : memref<2x1x16xf32, #tpu.memory_space<vmem>>, vector<1x1x16xf32>
    %114 = vector.shape_cast %113 : vector<1x1x16xf32> to vector<1x16xf32>
    %115 = vector.broadcast %114 : vector<1x16xf32> to vector<8x16xf32>
    %116 = arith.addf %112, %115 : vector<8x16xf32>
    %cst_58 = arith.constant 0.00999999977 : f32
    %117 = vector.broadcast %cst_58 : f32 to vector<8x16xf32>
    %118 = arith.mulf %117, %116 : vector<8x16xf32>
    %119 = arith.maximumf %116, %118 : vector<8x16xf32>
    %c1_59 = arith.constant 1 : index
    %c0_60 = arith.constant 0 : index
    %c0_61 = arith.constant 0 : index
    %120 = vector.load %arg15[%c1_59, %c0_60, %c0_61] : memref<2x16x32xbf16, #tpu.memory_space<vmem>>, vector<1x16x32xbf16>
    %121 = vector.shape_cast %120 : vector<1x16x32xbf16> to vector<16x32xbf16>
    %122 = arith.truncf %119 : vector<8x16xf32> to vector<8x16xbf16>
    %cst_62 = arith.constant dense<0.000000e+00> : vector<8x32xf32>
    %123 = tpu.matmul %122, %121, %cst_62 {dimension_numbers = #tpu.dot_dimension_numbers<[1], [0], [0], [1], [0, 0, 1, 1], [], []>} : vector<8x16xbf16>, vector<16x32xbf16>, vector<8x32xf32> -> vector<8x32xf32>
    %124 = arith.addf %108, %123 : vector<8x32xf32>
    %c1_63 = arith.constant 1 : index
    %c0_64 = arith.constant 0 : index
    %c0_65 = arith.constant 0 : index
    %125 = vector.load %arg16[%c1_63, %c0_64, %c0_65] : memref<2x1x32xf32, #tpu.memory_space<vmem>>, vector<1x1x32xf32>
    %126 = vector.shape_cast %125 : vector<1x1x32xf32> to vector<1x32xf32>
    %127 = vector.broadcast %126 : vector<1x32xf32> to vector<8x32xf32>
    %128 = arith.addf %124, %127 : vector<8x32xf32>
    %c0_66 = arith.constant 0 : index
    %c0_67 = arith.constant 0 : index
    %c0_68 = arith.constant 0 : index
    %129 = vector.load %arg17[%c0_66, %c0_67, %c0_68] : memref<1x8x32xf32, #tpu.memory_space<vmem>>, vector<1x8x32xf32>
    %130 = vector.shape_cast %129 : vector<1x8x32xf32> to vector<8x32xf32>
    %131 = vector.shape_cast %128 : vector<8x32xf32> to vector<1x8x32xf32>
    tpu.vector_store %arg17[%c0_66, %c0_67, %c0_68], %131 {strides = array<i32>} : memref<1x8x32xf32, #tpu.memory_space<vmem>>, vector<1x8x32xf32>,
    return
  }
  func.func @transform_0(%arg0: i32) -> (i32, i32, i32) {
    %c0_i32 = arith.constant 0 : i32
    %c0_i32_0 = arith.constant 0 : i32
    %c0_i32_1 = arith.constant 0 : i32
    return %arg0, %c0_i32, %c0_i32_0 : i32, i32, i32
  }
  func.func @transform_1(%arg0: i32) -> (i32, i32, i32) {
    %c0_i32 = arith.constant 0 : i32
    %c0_i32_0 = arith.constant 0 : i32
    %c0_i32_1 = arith.constant 0 : i32
    return %arg0, %c0_i32, %c0_i32_0 : i32, i32, i32
  }
  func.func @transform_2(%arg0: i32) -> (i32, i32) {
    %c0_i32 = arith.constant 0 : i32
    %c0_i32_0 = arith.constant 0 : i32
    %c0_i32_1 = arith.constant 0 : i32
    return %c0_i32, %c0_i32_0 : i32, i32
  }
  func.func @transform_3(%arg0: i32) -> (i32, i32) {
    %c0_i32 = arith.constant 0 : i32
    %c0_i32_0 = arith.constant 0 : i32
    %c0_i32_1 = arith.constant 0 : i32
    return %c0_i32, %c0_i32_0 : i32, i32
  }
  func.func @transform_4(%arg0: i32) -> (i32, i32) {
    %c0_i32 = arith.constant 0 : i32
    %c0_i32_0 = arith.constant 0 : i32
    %c0_i32_1 = arith.constant 0 : i32
    return %c0_i32, %c0_i32_0 : i32, i32
  }
  func.func @transform_5(%arg0: i32) -> (i32, i32) {
    %c0_i32 = arith.constant 0 : i32
    %c0_i32_0 = arith.constant 0 : i32
    %c0_i32_1 = arith.constant 0 : i32
    return %c0_i32, %c0_i32_0 : i32, i32
  }
  func.func @transform_6(%arg0: i32) -> (i32, i32) {
    %c0_i32 = arith.constant 0 : i32
    %c0_i32_0 = arith.constant 0 : i32
    %c0_i32_1 = arith.constant 0 : i32
    return %c0_i32, %c0_i32_0 : i32, i32
  }
  func.func @transform_7(%arg0: i32) -> (i32, i32) {
    %c0_i32 = arith.constant 0 : i32
    %c0_i32_0 = arith.constant 0 : i32
    %c0_i32_1 = arith.constant 0 : i32
    return %c0_i32, %c0_i32_0 : i32, i32
  }
  func.func @transform_8(%arg0: i32) -> (i32, i32) {
    %c0_i32 = arith.constant 0 : i32
    %c0_i32_0 = arith.constant 0 : i32
    %c0_i32_1 = arith.constant 0 : i32
    return %c0_i32, %c0_i32_0 : i32, i32
  }
  func.func @transform_9(%arg0: i32) -> (i32, i32) {
    %c0_i32 = arith.constant 0 : i32
    %c0_i32_0 = arith.constant 0 : i32
    %c0_i32_1 = arith.constant 0 : i32
    return %c0_i32, %c0_i32_0 : i32, i32
  }
  func.func @transform_10(%arg0: i32) -> (i32, i32) {
    %c0_i32 = arith.constant 0 : i32
    %c0_i32_0 = arith.constant 0 : i32
    %c0_i32_1 = arith.constant 0 : i32
    return %c0_i32, %c0_i32_0 : i32, i32
  }
  func.func @transform_11(%arg0: i32) -> (i32, i32) {
    %c0_i32 = arith.constant 0 : i32
    %c0_i32_0 = arith.constant 0 : i32
    %c0_i32_1 = arith.constant 0 : i32
    return %c0_i32, %c0_i32_0 : i32, i32
  }
  func.func @transform_12(%arg0: i32) -> (i32, i32, i32) {
    %c0_i32 = arith.constant 0 : i32
    %c0_i32_0 = arith.constant 0 : i32
    %c0_i32_1 = arith.constant 0 : i32
    %c0_i32_2 = arith.constant 0 : i32
    return %c0_i32, %c0_i32_0, %c0_i32_1 : i32, i32, i32
  }
  func.func @transform_13(%arg0: i32) -> (i32, i32, i32) {
    %c0_i32 = arith.constant 0 : i32
    %c0_i32_0 = arith.constant 0 : i32
    %c0_i32_1 = arith.constant 0 : i32
    %c0_i32_2 = arith.constant 0 : i32
    return %c0_i32, %c0_i32_0, %c0_i32_1 : i32, i32, i32
  }
  func.func @transform_14(%arg0: i32) -> (i32, i32, i32) {
    %c0_i32 = arith.constant 0 : i32
    %c0_i32_0 = arith.constant 0 : i32
    %c0_i32_1 = arith.constant 0 : i32
    %c0_i32_2 = arith.constant 0 : i32
    return %c0_i32, %c0_i32_0, %c0_i32_1 : i32, i32, i32
  }
  func.func @transform_15(%arg0: i32) -> (i32, i32, i32) {
    %c0_i32 = arith.constant 0 : i32
    %c0_i32_0 = arith.constant 0 : i32
    %c0_i32_1 = arith.constant 0 : i32
    %c0_i32_2 = arith.constant 0 : i32
    return %c0_i32, %c0_i32_0, %c0_i32_1 : i32, i32, i32
  }
  func.func @transform_16(%arg0: i32) -> (i32, i32, i32) {
    %c0_i32 = arith.constant 0 : i32
    %c0_i32_0 = arith.constant 0 : i32
    %c0_i32_1 = arith.constant 0 : i32
    return %arg0, %c0_i32, %c0_i32_0 : i32, i32, i32
  }
}

</mosaic_0001>

<bundles_post_ra>
// kernel: transformer_decoder_layer.1
= control target key start
LH: loop header
LB: loop body
LE: loop exit
PB: predicated region body
PF: predicated region fallthrough
CT: control target
= control target key end

     0   :  { %s3729_s21 = smov 0   ;;  %s4230_s0 = inlined_call_operand.vmem [shape: f32[2,8,32], index: 0, kind: input, shape index: {}]   ;;  %s4231_s1 = inlined_call_operand.vmem [shape: f32[2,8,32], index: 1, kind: input, shape index: {}]   ;;  %s4232_s2 = inlined_call_operand.vmem [shape: bf16[32,96], index: 2, kind: input, shape index: {}]   ;;  %s4233_s3 = inlined_call_operand.vmem [shape: f32[1,96], index: 3, kind: input, shape index: {}]   ;;  %s4234_s4 = inlined_call_operand.vmem [shape: bf16[32,32], index: 4, kind: input, shape index: {}]   ;;  %s4235_s5 = inlined_call_operand.vmem [shape: f32[1,32], index: 5, kind: input, shape index: {}]   ;;  %s4236_s6 = inlined_call_operand.vmem [shape: bf16[32,32], index: 6, kind: input, shape index: {}]   ;;  %s4237_s7 = inlined_call_operand.vmem [shape: f32[1,32], index: 7, kind: input, shape index: {}]   ;;  %s4238_s8 = inlined_call_operand.vmem [shape: bf16[32,64], index: 8, kind: input, shape index: {}]   ;;  %s4239_s9 = inlined_call_operand.vmem [shape: f32[1,64], index: 9, kind: input, shape index: {}]   ;;  %s4240_s10 = inlined_call_operand.vmem [shape: bf16[32,32], index: 10, kind: input, shape index: {}]   ;;  %s4241_s11 = inlined_call_operand.vmem [shape: f32[1,32], index: 11, kind: input, shape index: {}]   ;;  %s4242_s12 = inlined_call_operand.vmem [shape: bf16[2,32,16], index: 12, kind: input, shape index: {}]   ;;  %s4243_s13 = inlined_call_operand.vmem [shape: f32[2,1,16], index: 13, kind: input, shape index: {}]   ;;  %s4244_s14 = inlined_call_operand.vmem [shape: bf16[2,16,32], index: 14, kind: input, shape index: {}]   ;;  %s4245_s15 = inlined_call_operand.vmem [shape: f32[2,1,32], index: 15, kind: input, shape index: {}]   ;;  %s4246_s16 = inlined_call_operand.vmem [shape: f32[2,8,32], index: 16, kind: output, shape index: {}]  }
   0x1   :  { %4248 = sst [smem:[#allocation2_spill]] %s4230_s0 }
   0x2 LB: > { %s3251_s22 = sadd.s32 4294967295, %s3630_s21   ;;  %p3255_p0 = scmp.ge.s32.totalorder %s3630_s21, 1  ;;  %s3630_s21 = sphi %s3729_s21, %s26_s21  }
   0x3   : > { %p470_p1 = scmp.lt.s32.totalorder %s3630_s21, 3 }
   0x5   : > { %p471_p2 = pnand %p3255_p0, %p470_p1 }
   0x6   : > { %v3576_v0 = vld [vmem:[%s4232_s2] sm:$0xff] (!%p471_p2)   ;;  %v3632_v1 = vmov (!%p471_p2), 0.0   ;;  %v3577_v2 = vld [vmem:[%s4232_s2 + $0x8] sm:$0xff] (!%p471_p2)   ;;  %vm3633_vm0 = vmmov (!%p471_p2), 0   ;;  %p522_p3 = scmp.lt.s32.totalorder (!%p471_p2), %s3251_s22, 1  ;;  %s4249_s30 = sld [smem:[#allocation2_spill]] (!%p471_p2)  ;;  %v620_v16 = vlaneseq (!%p471_p2) }
   0x7   : > { %474 = sbr.rel (%p471_p2) target bundleno = 4032 (0xfc0), region = 84  ;;  %3392 = vmatprep.subr.bf16.mxu0 (!%p471_p2), %v3632_v1  ;;  %3400 = vmatprep.subr.bf16.mxu1 (!%p471_p2), %v3632_v1  ;;  %vm561_vm1 = vcmask (!%p471_p2), 261120   ;;  %v3259_v5 = vld [vmem:[%s4233_s3] ss:$0 sm:$0xff] (!%p471_p2)  ;;  %s3634_s19 = smov (!%p471_p2), 104   ;;  %vm1059_vm2 = vcmask (!%p471_p2), 64512  }
   0x8   : > { %3393 = vmatpush3.bf16.msra.mxu0 (!%p471_p2), %v3576_v0  ;;  %3396 = vmatprep.mubr.msk.bf16.mxu0 (!%p471_p2), %vm3633_vm0, %v3632_v1  ;;  %s3635_s20 = smov (!%p471_p2), 120   ;;  %s3637_s23 = smov (!%p471_p2), 112   ;;  %v3638_v14 = vmov (!%p471_p2), 1983009808   ;;  %v621_v18 = vshrl.u32 (!%p471_p2), %v620_v16, 7  ;;  %vm1295_vm3 = vcmask (!%p471_p2), 1043456  }
   0x9   : > { %3394 = vmatprep.subr.bf16.mxu0 (!%p471_p2), %v3632_v1  ;;  %3402 = vmatprep.mubr.msk.bf16.mxu1 (!%p471_p2), %vm3633_vm0, %v3632_v1  ;;  %v618_v15 = vunpack.c.l.s4 (!%p471_p2), %v3638_v14  ;;  %v3639_v19 = vmov (!%p471_p2), 1934713408   ;;  %s3640_s24 = smov (!%p471_p2), 64   ;;  %s4247_s17 = smov (!%p471_p2), 24   ;;  %vm1626_vm4 = vcmask (!%p471_p2), 130048   ;;  %vm1628_vm5 = vcmask (!%p471_p2), 195584  }
   0xa   : > { %v650_v20 = vunpack.c.l.s4 (!%p471_p2), %v3639_v19  ;;  %s4250_s25 = smov (!%p471_p2), 24  }
   0xb   : > { %v619_v17 = vunpack.c.0.s8 (!%p471_p2), %v618_v15 }
   0xc   : > { %3395 = vmatpush3.bf16.msra.mxu0 (!%p471_p2), %v3577_v2  ;;  %v651_v26 = vunpack.c.0.s8 (!%p471_p2), %v650_v20 }
   0xd   : > { %3406 = vmatprep.subr.bf16.mxu0 (!%p471_p2), %v3632_v1  ;;  %v3793_v23 = vsub.s32 (!%p471_p2), %v619_v17, %v621_v18 }
   0xe   : > { %s4252_s22 = smov (!%p522_p3, %s3251_s22), 1  ;;  %v3803_v33 = vsub.s32 %v651_v26, %v621_v18 }
   0xf   : > { %s3750_s27 = sshll.u32 %s4252_s22, 3  ;;  %s3636_s22 = smov 96  }
  0x10   : > { %s525_s0 = scalar_lea.vmem %s4249_s30, %s3750_s27  ;;  %s3641_s30 = smov 16  }
  0x11   : > { %v3757_v3 = vld [vmem:[%s525_s0] sm:$0xff]  ;;  %s3642_s0 = smov 8   ;;  %s529_s28 = scalar_lea.vmem %s4231_s1, %s3750_s27 }
  0x12   : > { %v541_v4 = vpack.c.bf16 %v3757_v3, %v3757_v3 }
  0x14   : > { %3397 = vmatmul.mubr.msk.bf16.vlgmr.msra.gmra.mrb[0].mxu0 %vm561_vm1, %v541_v4 }
  0x15   : > { %3408 = vmatprep.mubr.msk.bf16.mxu0 %vm3633_vm0, %v3632_v1 }
  0xe7   : > { %v599_v6 = vpop.f32.mrb[0].mxu0 }
  0xe8   : > { %v3767_v7 = vadd.f32 %v3259_v5, %v599_v6  ;;  %v3398_v8 = vpop.f32.mrb[1].mxu0 }
  0xe9   : > { %v602_v9 = vpop.f32.mrb[2].mxu0 }
  0xea   : > { %612 = vrot.lane.b32.xlu1 %v3767_v7, %s3634_s19  ;;  %606 = vrot.lane.b32.xlu0 %v3767_v7, %s3635_s20  ;;  %v3399_v10 = vpop.f32.mrb[3].mxu0 }
  0xee   : > { %755 = vrot.lane.b32.xlu1 %v3767_v7, %s3636_s22  ;;  %609 = vrot.lane.b32.xlu0 %v3767_v7, %s3637_s23 }
 0x15c   : > { %v3777_v11 = vpop.permute.xlu0 %606  ;;  %v3781_v12 = vpop.permute.xlu1 %612 }
 0x15d   : > { %757 = vrot.lane.b32.xlu0 %v3777_v11, %s3636_s22  ;;  %v631_v24 = vcombine.low %v3777_v11, %v3781_v12  ;;  %v632_v25 = vcombine.high %v3777_v11, %v3781_v12 }
 0x15f   : > { %v639_v29 = vrot.slane %v631_v24, %v3793_v23  ;;  %v646_v30 = vrot.slane %v632_v25, %v3793_v23 }
 0x160   : > { %v3783_v13 = vpop.permute.xlu0 %609  ;;  %v756_v31 = vpop.permute.xlu1 %755 }
 0x161   : > { %761 = vrot.lane.b32.xlu0 %v3781_v12, %s3636_s22  ;;  %759 = vrot.lane.b32.xlu1 %v3783_v13, %s3636_s22  ;;  %v615_v21 = vcombine.low %v3767_v7, %v3783_v13  ;;  %v616_v22 = vcombine.high %v3767_v7, %v3783_v13 }
 0x163   : > { %v623_v27 = vrot.slane %v615_v21, %v3793_v23  ;;  %v630_v28 = vrot.slane %v616_v22, %v3793_v23 }
 0x165   : > { %v647_v34 = vcombine.low %v623_v27, %v639_v29  ;;  %v648_v35 = vcombine.high %v623_v27, %v639_v29  ;;  %v663_v36 = vcombine.low %v630_v28, %v646_v30  ;;  %v664_v37 = vcombine.high %v630_v28, %v646_v30 }
 0x167   : > { %v655_v44 = vrot.slane %v647_v34, %v3803_v33  ;;  %v662_v45 = vrot.slane %v648_v35, %v3803_v33  ;;  %v671_v46 = vrot.slane %v663_v36, %v3803_v33  ;;  %v678_v47 = vrot.slane %v664_v37, %v3803_v33 }
 0x169   : > { %v683_v56 = vcombine.low %v655_v44, %v662_v45  ;;  %v3263_v57 = vcombine.high %v655_v44, %v662_v45  ;;  %v699_v58 = vcombine.low %v671_v46, %v678_v47  ;;  %v3264_v59 = vcombine.high %v671_v46, %v678_v47 }
 0x16b   : > { %v690_v6 = vrot.slane %v683_v56, %v3793_v23  ;;  %v698_v8 = vrot.slane %v3263_v57, %v3793_v23  ;;  %v706_v9 = vrot.slane %v699_v58, %v3793_v23  ;;  %v714_v10 = vrot.slane %v3264_v59, %v3793_v23 }
 0x16d   : > { %v715_v25 = vcombine.low %v690_v6, %v698_v8  ;;  %v731_v26 = vcombine.low %v706_v9, %v714_v10 }
 0x16f   : > { %v723_v34 = vrot.slane %v715_v25, %v3803_v33  ;;  %v739_v35 = vrot.slane %v731_v26, %v3803_v33 }
 0x1cf   : > { %v758_v32 = vpop.permute.xlu0 %757 }
 0x1d3   : > { %v760_v38 = vpop.permute.xlu1 %759  ;;  %v762_v39 = vpop.permute.xlu0 %761 }
 0x1d4   : > { %v767_v40 = vcombine.low %v756_v31, %v760_v38  ;;  %v768_v41 = vcombine.high %v756_v31, %v760_v38  ;;  %v783_v42 = vcombine.low %v758_v32, %v762_v39  ;;  %v784_v43 = vcombine.high %v758_v32, %v762_v39 }
 0x1d6   : > { %v775_v48 = vrot.slane %v767_v40, %v3793_v23  ;;  %v782_v49 = vrot.slane %v768_v41, %v3793_v23  ;;  %v791_v50 = vrot.slane %v783_v42, %v3793_v23  ;;  %v798_v51 = vrot.slane %v784_v43, %v3793_v23 }
 0x1d7   : > { %v716_v40 = vcombine.high %v690_v6, %v698_v8  ;;  %v732_v41 = vcombine.high %v706_v9, %v714_v10  ;;  %v747_v42 = vcombine.low %v723_v34, %v739_v35  ;;  %v748_v43 = vcombine.high %v723_v34, %v739_v35 }
 0x1d8   : > { %v799_v52 = vcombine.low %v775_v48, %v791_v50  ;;  %v800_v53 = vcombine.high %v775_v48, %v791_v50  ;;  %v815_v54 = vcombine.low %v782_v49, %v798_v51  ;;  %v816_v55 = vcombine.high %v782_v49, %v798_v51 }
 0x1d9   : > { %v751_v46 = vpack.c.bf16 %v747_v42, %v747_v42  ;;  %v752_v47 = vpack.c.bf16 %v748_v43, %v748_v43  ;;  %v730_v48 = vrot.slane %v716_v40, %v3803_v33  ;;  %v746_v49 = vrot.slane %v732_v41, %v3803_v33 }
 0x1da   : > { %v807_v60 = vrot.slane %v799_v52, %v3803_v33  ;;  %v814_v61 = vrot.slane %v800_v53, %v3803_v33  ;;  %v823_v62 = vrot.slane %v815_v54, %v3803_v33  ;;  %v830_v63 = vrot.slane %v816_v55, %v3803_v33 }
 0x1db   : > { %v749_v52 = vcombine.low %v730_v48, %v746_v49  ;;  %v750_v53 = vcombine.high %v730_v48, %v746_v49 }
 0x1dc   : > { %v835_v0 = vcombine.low %v807_v60, %v814_v61  ;;  %v3265_v2 = vcombine.high %v807_v60, %v814_v61  ;;  %v851_v4 = vcombine.low %v823_v62, %v830_v63  ;;  %v3266_v5 = vcombine.high %v823_v62, %v830_v63 }
 0x1dd   : > { %v753_v54 = vpack.c.bf16 %v749_v52, %v749_v52  ;;  %v754_v55 = vpack.c.bf16 %v750_v53, %v750_v53 }
 0x1de   : > { %v842_v14 = vrot.slane %v835_v0, %v3793_v23  ;;  %v850_v15 = vrot.slane %v3265_v2, %v3793_v23  ;;  %v858_v16 = vrot.slane %v851_v4, %v3793_v23  ;;  %v866_v17 = vrot.slane %v3266_v5, %v3793_v23 }
 0x1e0   : > { %v867_v18 = vcombine.low %v842_v14, %v850_v15  ;;  %v883_v19 = vcombine.low %v858_v16, %v866_v17  ;;  %v868_v20 = vcombine.high %v842_v14, %v850_v15  ;;  %v884_v21 = vcombine.high %v858_v16, %v866_v17 }
 0x1e2   : > { %v875_v22 = vrot.slane %v867_v18, %v3803_v33  ;;  %v891_v24 = vrot.slane %v883_v19, %v3803_v33  ;;  %v882_v29 = vrot.slane %v868_v20, %v3803_v33  ;;  %v898_v30 = vrot.slane %v884_v21, %v3803_v33 }
 0x1e4   : > { %v899_v27 = vcombine.low %v875_v22, %v891_v24  ;;  %v900_v28 = vcombine.high %v875_v22, %v891_v24  ;;  %v901_v38 = vcombine.low %v882_v29, %v898_v30  ;;  %v902_v39 = vcombine.high %v882_v29, %v898_v30 }
 0x1e6   : > { %v903_v31 = vpack.c.bf16 %v899_v27, %v899_v27  ;;  %v904_v32 = vpack.c.bf16 %v900_v28, %v900_v28  ;;  %v905_v44 = vpack.c.bf16 %v901_v38, %v901_v38  ;;  %v906_v45 = vpack.c.bf16 %v902_v39, %v902_v39 }
 0x1e8   : > { %v1064_v36 = vsel %vm1059_vm2, %v903_v31, 0  ;;  %v1110_v37 = vsel %vm1059_vm2, %v904_v32, 0  ;;  %v1156_v50 = vsel %vm1059_vm2, %v905_v44, 0  ;;  %v1202_v51 = vsel %vm1059_vm2, %v906_v45, 0 }
 0x1e9   : > { %3401 = vmatpush3.bf16.xpose.msra.mxu1 %v1064_v36  ;;  %3407 = vmatpush3.bf16.xpose.msra.mxu0 %v1110_v37 }
 0x1ea   : > { %3412 = vmatprep.subr.bf16.mxu1 %v3632_v1  ;;  %3418 = vmatprep.subr.bf16.mxu0 %v3632_v1 }
 0x1f0   : > { %3403 = vmatmul.mubr.msk.bf16.vlgmr.msra.gmra.mrb[0].mxu1 %vm1059_vm2, %v751_v46  ;;  %3409 = vmatmul.mubr.msk.bf16.vlgmr.msra.gmra.mrb[4].mxu0 %vm1059_vm2, %v752_v47 }
 0x1f1   : > { %3413 = vmatpush3.bf16.xpose.msra.mxu1 %v1156_v50  ;;  %3419 = vmatpush3.bf16.xpose.msra.mxu0 %v1202_v51 }
 0x1f2   : > { %3414 = vmatprep.mubr.msk.bf16.mxu1 %vm3633_vm0, %v3632_v1  ;;  %3420 = vmatprep.mubr.msk.bf16.mxu0 %vm3633_vm0, %v3632_v1 }
 0x1f3   : > { %3424 = vmatprep.subr.bf16.mxu1 %v3632_v1  ;;  %3430 = vmatprep.subr.bf16.mxu0 %v3632_v1 }
 0x1f8   : > { %3415 = vmatmul.mubr.msk.bf16.vlgmr.msra.gmra.mrb[4].mxu1 %vm1059_vm2, %v753_v54  ;;  %3421 = vmatmul.mubr.msk.bf16.vlgmr.msra.gmra.mrb[8].mxu0 %vm1059_vm2, %v754_v55 }
 0x1f9   : > { %3426 = vmatprep.mubr.msk.bf16.mxu1 %vm3633_vm0, %v3632_v1  ;;  %3432 = vmatprep.mubr.msk.bf16.mxu0 %vm3633_vm0, %v3632_v1 }
 0x2c3   : > { %v1100_v56 = vpop.f32.mrb[0].mxu1  ;;  %v1146_v57 = vpop.f32.mrb[4].mxu0 }
 0x2c4   : > { %v3404_v58 = vpop.f32.mrb[1].mxu1  ;;  %v3410_v59 = vpop.f32.mrb[5].mxu0  ;;  %v1244_v60 = vsel %vm1059_vm2, %v1100_v56, -inf  ;;  %v1247_v61 = vsel %vm1059_vm2, %v1146_v57, -inf }
 0x2c5   : > { %1245 = vmax.xlane.f32.xlu1 %v1244_v60  ;;  %v1103_v62 = vpop.f32.mrb[2].mxu1  ;;  %1248 = vmax.xlane.f32.xlu0 %v1247_v61  ;;  %v1149_v63 = vpop.f32.mrb[6].mxu0 }
 0x2c6   : > { %v3405_v0 = vpop.f32.mrb[3].mxu1  ;;  %v3411_v2 = vpop.f32.mrb[7].mxu0 }
 0x2cb   : > { %v1192_v4 = vpop.f32.mrb[4].mxu1  ;;  %v1238_v5 = vpop.f32.mrb[8].mxu0 }
 0x2cc   : > { %v3416_v6 = vpop.f32.mrb[5].mxu1  ;;  %v3422_v8 = vpop.f32.mrb[9].mxu0  ;;  %v1250_v9 = vsel %vm1059_vm2, %v1192_v4, -inf  ;;  %v1253_v10 = vsel %vm1059_vm2, %v1238_v5, -inf }
 0x2cd   : > { %v1195_v14 = vpop.f32.mrb[6].mxu1  ;;  %1251 = vmax.xlane.f32.xlu0 %v1250_v9  ;;  %1254 = vmax.xlane.f32.xlu1 %v1253_v10  ;;  %v1241_v15 = vpop.f32.mrb[10].mxu0 }
 0x2ce   : > { %v3417_v16 = vpop.f32.mrb[7].mxu1  ;;  %v3423_v17 = vpop.f32.mrb[11].mxu0 }
 0x2de   : > { %909 = vrot.lane.b32.xlu1 %v3777_v11, %s3640_s24 }
 0x2e3   : > { %907 = vrot.lane.b32.xlu0 %v3767_v7, %s3640_s24 }
 0x352   : > { %v1246_v18 = vpop.xlane.xlu1 %1245  ;;  %v1249_v19 = vpop.xlane.xlu0 %1248 }
 0x353   : > { %v1256_v20 = vsub.f32 %v1100_v56, %v1246_v18  ;;  %v1257_v21 = vsub.f32 %v1146_v57, %v1249_v19 }
 0x355   : > { %v1260_v22 = vmul.f32 1.442695, %v1256_v20  ;;  %v1262_v24 = vmul.f32 1.442695, %v1257_v21 }
 0x357   : > { %3592 = vpow2.f32 %v1260_v22 }
 0x358   : > { %3594 = vpow2.f32 %v1262_v24 }
 0x35a   : > { %v1255_v7 = vpop.xlane.xlu1 %1254  ;;  %v1252_v28 = vpop.xlane.xlu0 %1251 }
 0x35b   : > { %v1259_v29 = vsub.f32 %v1238_v5, %v1255_v7  ;;  %v1258_v30 = vsub.f32 %v1192_v4, %v1252_v28 }
 0x35d   : > { %v1266_v31 = vmul.f32 1.442695, %v1259_v29  ;;  %v1264_v32 = vmul.f32 1.442695, %v1258_v30 }
 0x35e   : > { %v910_v37 = vpop.permute.xlu1 %909 }
 0x35f   : > { %3596 = vpow2.f32 %v1266_v31 }
 0x360   : > { %3598 = vpow2.f32 %v1264_v32 }
 0x361   : > { %v3859_v25 = vpop.eup %3592 }
 0x362   : > { %v3861_v26 = vpop.eup %3594  ;;  %v1268_v27 = vsel %vm1059_vm2, %v3859_v25, 0.0 }
 0x363   : > { %1269 = vadd.xlane.f32.xlu0 %v1268_v27  ;;  %v1271_v11 = vsel %vm1059_vm2, %v3861_v26, 0.0 }
 0x364   : > { %1272 = vadd.xlane.f32.xlu1 %v1271_v11 }
 0x369   : > { %v3869_v34 = vpop.eup %3596 }
 0x36a   : > { %v3871_v35 = vpop.eup %3598  ;;  %v1277_v36 = vsel %vm1059_vm2, %v3869_v34, 0.0 }
 0x375   : > { %911 = vrot.lane.b32.xlu1 %v3783_v13, %s3640_s24  ;;  %v1274_v13 = vsel %vm1059_vm2, %v3871_v35, 0.0 }
 0x379   : > { %913 = vrot.lane.b32.xlu0 %v3781_v12, %s3640_s24  ;;  %v908_v12 = vpop.permute.xlu0 %907 }
 0x398   : > { %1278 = vadd.xlane.f32.xlu0 %v1277_v36 }
 0x399   : > { %1275 = vadd.xlane.f32.xlu1 %v1274_v13 }
 0x3f0   : > { %v1270_v38 = vpop.xlane.xlu0 %1269 }
 0x3f1   : > { %v1273_v39 = vpop.xlane.xlu1 %1272  ;;  %3600 = vrcp.f32 %v1270_v38 }
 0x3f2   : > { %3602 = vrcp.f32 %v1273_v39 }
 0x3f4   : > { %v914_v40 = vpop.permute.xlu0 %913 }
 0x3f5   : > { %v935_v41 = vcombine.low %v910_v37, %v914_v40  ;;  %v936_v42 = vcombine.high %v910_v37, %v914_v40  ;;  %v912_v43 = vpop.permute.xlu1 %911 }
 0x3f6   : > { %v919_v44 = vcombine.low %v908_v12, %v912_v43  ;;  %v920_v45 = vcombine.high %v908_v12, %v912_v43 }
 0x3f7   : > { %v943_v46 = vrot.slane %v935_v41, %v3793_v23  ;;  %v950_v47 = vrot.slane %v936_v42, %v3793_v23 }
 0x3f8   : > { %v927_v48 = vrot.slane %v919_v44, %v3793_v23  ;;  %v934_v49 = vrot.slane %v920_v45, %v3793_v23 }
 0x3fa   : > { %v951_v50 = vcombine.low %v927_v48, %v943_v46  ;;  %v952_v51 = vcombine.high %v927_v48, %v943_v46  ;;  %v967_v52 = vcombine.low %v934_v49, %v950_v47  ;;  %v968_v53 = vcombine.high %v934_v49, %v950_v47 }
 0x3fb   : > { %v3601_v14 = vpop.eup %3600 }
 0x3fc   : > { %v959_v54 = vrot.slane %v951_v50, %v3803_v33  ;;  %v966_v55 = vrot.slane %v952_v51, %v3803_v33  ;;  %v975_v56 = vrot.slane %v967_v52, %v3803_v33  ;;  %v982_v57 = vrot.slane %v968_v53, %v3803_v33  ;;  %v3603_v17 = vpop.eup %3602 }
 0x3fd   : > { %v1284_v22 = vmul.f32 %v3601_v14, %v3859_v25  ;;  %v1285_v24 = vmul.f32 %v3603_v17, %v3861_v26 }
 0x3fe   : > { %v987_v58 = vcombine.low %v959_v54, %v966_v55  ;;  %v3267_v59 = vcombine.high %v959_v54, %v966_v55  ;;  %v1003_v60 = vcombine.low %v975_v56, %v982_v57  ;;  %v3268_v61 = vcombine.high %v975_v56, %v982_v57 }
 0x3ff   : > { %v1288_v31 = vpack.c.bf16 %v1284_v22, %v1284_v22  ;;  %v1289_v32 = vpack.c.bf16 %v1285_v24, %v1285_v24 }
 0x400   : > { %v994_v62 = vrot.slane %v987_v58, %v3793_v23  ;;  %v1002_v63 = vrot.slane %v3267_v59, %v3793_v23  ;;  %v1010_v0 = vrot.slane %v1003_v60, %v3793_v23  ;;  %v1018_v2 = vrot.slane %v3268_v61, %v3793_v23 }
 0x402   : > { %v1019_v4 = vcombine.low %v994_v62, %v1002_v63  ;;  %v1020_v5 = vcombine.high %v994_v62, %v1002_v63  ;;  %v1035_v6 = vcombine.low %v1010_v0, %v1018_v2  ;;  %v1036_v8 = vcombine.high %v1010_v0, %v1018_v2 }
 0x404   : > { %v1027_v9 = vrot.slane %v1019_v4, %v3803_v33  ;;  %v1034_v10 = vrot.slane %v1020_v5, %v3803_v33  ;;  %v1043_v15 = vrot.slane %v1035_v6, %v3803_v33  ;;  %v1050_v16 = vrot.slane %v1036_v8, %v3803_v33  ;;  %v3578_v6 = vld [vmem:[%s4234_s4] sm:$0xff]  }
 0x406   : > { %v1051_v18 = vcombine.low %v1027_v9, %v1043_v15  ;;  %v1052_v19 = vcombine.high %v1027_v9, %v1043_v15  ;;  %v1053_v20 = vcombine.low %v1034_v10, %v1050_v16  ;;  %v1054_v21 = vcombine.high %v1034_v10, %v1050_v16 }
 0x408   : > { %v1055_v27 = vpack.c.bf16 %v1051_v18, %v1051_v18  ;;  %v1056_v11 = vpack.c.bf16 %v1052_v19, %v1052_v19  ;;  %v1057_v29 = vpack.c.bf16 %v1053_v20, %v1053_v20  ;;  %v1058_v30 = vpack.c.bf16 %v1054_v21, %v1054_v21  ;;  %v3579_v19 = vld [vmem:[%s4234_s4 + $0x8] sm:$0xff]  }
 0x40a   : > { %v1297_v7 = vsel %vm1295_vm3, %v1055_v27, 0  ;;  %v1343_v28 = vsel %vm1295_vm3, %v1056_v11, 0  ;;  %v1389_v25 = vsel %vm1295_vm3, %v1057_v29, 0  ;;  %v1435_v26 = vsel %vm1295_vm3, %v1058_v30, 0 }
 0x40b   : > { %3425 = vmatpush3.bf16.msra.mxu1 %v1297_v7  ;;  %3431 = vmatpush3.bf16.msra.mxu0 %v1343_v28 }
 0x40c   : > { %3436 = vmatprep.subr.bf16.mxu1 %v3632_v1  ;;  %3442 = vmatprep.subr.bf16.mxu0 %v3632_v1 }
 0x40e   : > { %3427 = vmatmul.mubr.msk.bf16.vlgmr.msra.gmra.mrb[8].mxu1 %vm1059_vm2, %v1288_v31  ;;  %3433 = vmatmul.mubr.msk.bf16.vlgmr.msra.gmra.mrb[12].mxu0 %vm1059_vm2, %v1289_v32 }
 0x40f   : > { %3437 = vmatpush3.bf16.msra.mxu1 %v1389_v25  ;;  %3443 = vmatpush3.bf16.msra.mxu0 %v1435_v26 }
 0x410   : > { %3438 = vmatprep.mubr.msk.bf16.mxu1 %vm3633_vm0, %v3632_v1  ;;  %3444 = vmatprep.mubr.msk.bf16.mxu0 %vm3633_vm0, %v3632_v1 }
 0x411   : > { %3448 = vmatprep.subr.bf16.mxu1 %v3632_v1  ;;  %3456 = vmatprep.subr.bf16.mxu0 %v3632_v1 }
 0x425   : > { %v1279_v36 = vpop.xlane.xlu0 %1278 }
 0x426   : > { %3604 = vrcp.f32 %v1279_v36  ;;  %v1276_v13 = vpop.xlane.xlu1 %1275 }
 0x427   : > { %3606 = vrcp.f32 %v1276_v13 }
 0x430   : > { %v3605_v12 = vpop.eup %3604 }
 0x431   : > { %v3607_v37 = vpop.eup %3606  ;;  %v1287_v38 = vmul.f32 %v3605_v12, %v3869_v34 }
 0x432   : > { %v1286_v39 = vmul.f32 %v3607_v37, %v3871_v35 }
 0x433   : > { %v1291_v40 = vpack.c.bf16 %v1287_v38, %v1287_v38 }
 0x434   : > { %v1290_v41 = vpack.c.bf16 %v1286_v39, %v1286_v39 }
 0x435   : > { %3445 = vmatmul.mubr.msk.bf16.vlgmr.msra.gmra.mrb[16].mxu0 %vm1059_vm2, %v1291_v40 }
 0x436   : > { %3439 = vmatmul.mubr.msk.bf16.vlgmr.msra.gmra.mrb[12].mxu1 %vm1059_vm2, %v1290_v41  ;;  %3460 = vmatprep.mubr.msk.bf16.mxu0 %vm3633_vm0, %v3632_v1 }
 0x437   : > { %3452 = vmatprep.mubr.msk.bf16.mxu1 %vm3633_vm0, %v3632_v1  ;;  %3449 = vmatpush3.bf16.msra.mxu1 %v3578_v6 }
 0x438   : > { %3450 = vmatprep.subr.bf16.mxu1 %v3632_v1 }
 0x43b   : > { %3451 = vmatpush3.bf16.msra.mxu1 %v3579_v19 }
 0x43c   : > { %3464 = vmatprep.subr.bf16.mxu1 %v3632_v1 }
 0x4e1   : > { %v1333_v42 = vpop.f32.mrb[8].mxu1  ;;  %v1379_v43 = vpop.f32.mrb[12].mxu0 }
 0x4e2   : > { %v3428_v44 = vpop.f32.mrb[9].mxu1  ;;  %v3434_v45 = vpop.f32.mrb[13].mxu0 }
 0x4e3   : > { %v1336_v46 = vpop.f32.mrb[10].mxu1  ;;  %v1382_v34 = vpop.f32.mrb[14].mxu0  ;;  %v3581_v44 = vld [vmem:[%s4238_s8 + $0x8] sm:$0xff]   ;;  %v536_v45 = vld [vmem:[%s529_s28] sm:$0xff] }
 0x4e4   : > { %v3429_v47 = vpop.f32.mrb[11].mxu1  ;;  %v3435_v35 = vpop.f32.mrb[15].mxu0  ;;  %v1770_v46 = vpack.c.bf16 %v536_v45, %v536_v45  ;;  %v3582_v34 = vld [vmem:[%s4236_s6] sm:$0xff]  }
 0x4e5   : > { %3457 = vmatpush3.bf16.msra.mxu0 %v3582_v34  ;;  %v3583_v47 = vld [vmem:[%s4236_s6 + $0x8] sm:$0xff]   ;;  %v3283_v45 = vld [vmem:[%s4237_s7] ss:$0 sm:$0xff] }
 0x4e6   : > { %3458 = vmatprep.subr.bf16.mxu0 %v3632_v1 }
 0x4e9   : > { %3459 = vmatpush3.bf16.msra.mxu0 %v3583_v47 }
 0x4ea   : > { %3472 = vmatprep.subr.bf16.mxu0 %v3632_v1 }
 0x508   : > { %v1471_v48 = vpop.f32.mrb[16].mxu0 }
 0x509   : > { %v1425_v49 = vpop.f32.mrb[12].mxu1  ;;  %v1493_v50 = vcombine.low %v1379_v43, %v1471_v48  ;;  %v1494_v51 = vcombine.high %v1379_v43, %v1471_v48  ;;  %v3446_v52 = vpop.f32.mrb[17].mxu0  ;;  %v3282_v48 = vld [vmem:[%s4235_s5] ss:$0 sm:$0xff] }
 0x50a   : > { %v1477_v53 = vcombine.low %v1333_v42, %v1425_v49  ;;  %v1478_v54 = vcombine.high %v1333_v42, %v1425_v49  ;;  %v3440_v55 = vpop.f32.mrb[13].mxu1  ;;  %v1474_v56 = vpop.f32.mrb[18].mxu0  ;;  %v3580_v42 = vld [vmem:[%s4238_s8] sm:$0xff]  }
 0x50b   : > { %v1501_v57 = vrot.slane %v1493_v50, %v3793_v23  ;;  %v1508_v58 = vrot.slane %v1494_v51, %v3793_v23  ;;  %v1428_v59 = vpop.f32.mrb[14].mxu1  ;;  %v3447_v60 = vpop.f32.mrb[19].mxu0  ;;  %v3287_v55 = vld [vmem:[%s4239_s9] ss:$0 sm:$0xff] }
 0x50c   : > { %v1485_v61 = vrot.slane %v1477_v53, %v3793_v23  ;;  %v1492_v62 = vrot.slane %v1478_v54, %v3793_v23  ;;  %v3441_v63 = vpop.f32.mrb[15].mxu1 }
 0x50e   : > { %v1509_v0 = vcombine.low %v1485_v61, %v1501_v57  ;;  %v1510_v2 = vcombine.high %v1485_v61, %v1501_v57  ;;  %v1525_v4 = vcombine.low %v1492_v62, %v1508_v58  ;;  %v1526_v5 = vcombine.high %v1492_v62, %v1508_v58 }
 0x510   : > { %v1517_v8 = vrot.slane %v1509_v0, %v3803_v33  ;;  %v1524_v9 = vrot.slane %v1510_v2, %v3803_v33  ;;  %v1533_v10 = vrot.slane %v1525_v4, %v3803_v33  ;;  %v1540_v14 = vrot.slane %v1526_v5, %v3803_v33 }
 0x512   : > { %v1545_v15 = vcombine.low %v1517_v8, %v1524_v9  ;;  %v3277_v16 = vcombine.high %v1517_v8, %v1524_v9  ;;  %v1561_v17 = vcombine.low %v1533_v10, %v1540_v14  ;;  %v3278_v18 = vcombine.high %v1533_v10, %v1540_v14 }
 0x514   : > { %v1552_v20 = vrot.slane %v1545_v15, %v3793_v23  ;;  %v1560_v21 = vrot.slane %v3277_v16, %v3793_v23  ;;  %v1568_v22 = vrot.slane %v1561_v17, %v3793_v23  ;;  %v1576_v24 = vrot.slane %v3278_v18, %v3793_v23 }
 0x516   : > { %v1578_v27 = vcombine.high %v1552_v20, %v1560_v21  ;;  %v1594_v11 = vcombine.high %v1568_v22, %v1576_v24  ;;  %v1577_v7 = vcombine.low %v1552_v20, %v1560_v21  ;;  %v1593_v28 = vcombine.low %v1568_v22, %v1576_v24 }
 0x518   : > { %v1592_v29 = vrot.slane %v1578_v27, %v3803_v33  ;;  %v1608_v30 = vrot.slane %v1594_v11, %v3803_v33  ;;  %v1585_v31 = vrot.slane %v1577_v7, %v3803_v33  ;;  %v1601_v32 = vrot.slane %v1593_v28, %v3803_v33 }
 0x51a   : > { %v1611_v25 = vcombine.low %v1592_v29, %v1608_v30  ;;  %v1610_v26 = vcombine.high %v1585_v31, %v1601_v32  ;;  %v1612_v36 = vcombine.high %v1592_v29, %v1608_v30  ;;  %v1609_v13 = vcombine.low %v1585_v31, %v1601_v32 }
 0x51c   : > { %1618 = vrot.lane.b32.xlu1 %v1611_v25, %s3641_s30  ;;  %1614 = vrot.lane.b32.xlu0 %v1610_v26, %s3642_s0 }
 0x520   : > { %1622 = vrot.lane.b32.xlu1 %v1612_v36, %s4247_s17 }
 0x58e   : > { %v1619_v12 = vpop.permute.xlu1 %1618  ;;  %v1615_v37 = vpop.permute.xlu0 %1614 }
 0x58f   : > { %v1625_v38 = vsel %vm1059_vm2, %v1609_v13, %v1615_v37 }
 0x590   : > { %v1627_v40 = vsel %vm1626_vm4, %v1625_v38, %v1619_v12 }
 0x592   : > { %v1623_v39 = vpop.permute.xlu1 %1622 }
 0x593   : > { %v1629_v41 = vsel %vm1628_vm5, %v1627_v40, %v1623_v39 }
 0x594   : > { %v1634_v43 = vpack.c.bf16 %v1629_v41, %v1629_v41 }
 0x596   : > { %3453 = vmatmul.mubr.msk.bf16.vlgmr.msra.gmra.mrb[16].mxu1 %vm561_vm1, %v1634_v43 }
 0x597   : > { %3465 = vmatpush3.bf16.msra.mxu1 %v3580_v42  ;;  %3468 = vmatprep.mubr.msk.bf16.mxu1 %vm3633_vm0, %v3632_v1 }
 0x598   : > { %3466 = vmatprep.subr.bf16.mxu1 %v3632_v1 }
 0x59b   : > { %3467 = vmatpush3.bf16.msra.mxu1 %v3581_v44 }
 0x59c   : > { %3478 = vmatprep.subr.bf16.mxu1 %v3632_v1 }
 0x59e   : > { %3469 = vmatmul.mubr.msk.bf16.vlgmr.msra.gmra.mrb[20].mxu1 %vm561_vm1, %v1770_v46 }
 0x59f   : > { %3480 = vmatprep.mubr.msk.bf16.mxu1 %vm3633_vm0, %v3632_v1 }
 0x669   : > { %v1684_v35 = vpop.f32.mrb[16].mxu1 }
 0x66a   : > { %v1690_v49 = vadd.f32 %v1684_v35, %v3757_v3  ;;  %v3454_v50 = vpop.f32.mrb[17].mxu1 }
 0x66b   : > { %v1687_v51 = vpop.f32.mrb[18].mxu1 }
 0x66c   : > { %v3977_v52 = vadd.f32 %v3282_v48, %v1690_v49  ;;  %v3455_v53 = vpop.f32.mrb[19].mxu1 }
 0x66e   : > { %v1703_v54 = vpack.c.bf16 %v3977_v52, %v3977_v52 }
 0x670   : > { %3461 = vmatmul.mubr.msk.bf16.vlgmr.msra.gmra.mrb[20].mxu0 %vm561_vm1, %v1703_v54 }
 0x671   : > { %v1827_v56 = vpop.f32.mrb[20].mxu1  ;;  %3474 = vmatprep.mubr.msk.bf16.mxu0 %vm3633_vm0, %v3632_v1 }
 0x672   : > { %v3987_v57 = vadd.f32 %v3287_v55, %v1827_v56  ;;  %v3470_v3 = vpop.f32.mrb[21].mxu1 }
 0x673   : > { %v1830_v58 = vpop.f32.mrb[22].mxu1 }
 0x674   : > { %1984 = vrot.lane.b32.xlu0 %v3987_v57, %s3635_s20  ;;  %1987 = vrot.lane.b32.xlu1 %v3987_v57, %s3637_s23  ;;  %v3471_v59 = vpop.f32.mrb[23].mxu1 }
 0x678   : > { %1990 = vrot.lane.b32.xlu0 %v3987_v57, %s3634_s19 }
 0x6e6   : > { %v3995_v60 = vpop.permute.xlu0 %1984  ;;  %v3997_v61 = vpop.permute.xlu1 %1987 }
 0x6e7   : > { %v1993_v62 = vcombine.low %v3987_v57, %v3997_v61  ;;  %v1994_v63 = vcombine.high %v3987_v57, %v3997_v61 }
 0x6e9   : > { %v2001_v2 = vrot.slane %v1993_v62, %v3793_v23  ;;  %v2008_v4 = vrot.slane %v1994_v63, %v3793_v23 }
 0x6ea   : > { %v4003_v0 = vpop.permute.xlu0 %1990 }
 0x6eb   : > { %v2009_v5 = vcombine.low %v3995_v60, %v4003_v0  ;;  %v2010_v6 = vcombine.high %v3995_v60, %v4003_v0 }
 0x6ed   : > { %v2017_v8 = vrot.slane %v2009_v5, %v3793_v23  ;;  %v2024_v9 = vrot.slane %v2010_v6, %v3793_v23 }
 0x6ef   : > { %v2025_v10 = vcombine.low %v2001_v2, %v2017_v8  ;;  %v2026_v14 = vcombine.high %v2001_v2, %v2017_v8  ;;  %v2041_v15 = vcombine.low %v2008_v4, %v2024_v9  ;;  %v2042_v16 = vcombine.high %v2008_v4, %v2024_v9 }
 0x6f1   : > { %v2033_v17 = vrot.slane %v2025_v10, %v3803_v33  ;;  %v2040_v18 = vrot.slane %v2026_v14, %v3803_v33  ;;  %v2049_v19 = vrot.slane %v2041_v15, %v3803_v33  ;;  %v2056_v20 = vrot.slane %v2042_v16, %v3803_v33 }
 0x6f3   : > { %v2061_v21 = vcombine.low %v2033_v17, %v2040_v18  ;;  %v3293_v22 = vcombine.high %v2033_v17, %v2040_v18  ;;  %v2077_v24 = vcombine.low %v2049_v19, %v2056_v20  ;;  %v3294_v27 = vcombine.high %v2049_v19, %v2056_v20 }
 0x6f5   : > { %v2068_v11 = vrot.slane %v2061_v21, %v3793_v23  ;;  %v2076_v7 = vrot.slane %v3293_v22, %v3793_v23  ;;  %v2084_v28 = vrot.slane %v2077_v24, %v3793_v23  ;;  %v2092_v29 = vrot.slane %v3294_v27, %v3793_v23 }
 0x6f7   : > { %v2093_v30 = vcombine.low %v2068_v11, %v2076_v7  ;;  %v2109_v31 = vcombine.low %v2084_v28, %v2092_v29  ;;  %v2094_v32 = vcombine.high %v2068_v11, %v2076_v7  ;;  %v2110_v25 = vcombine.high %v2084_v28, %v2092_v29 }
 0x6f9   : > { %v2101_v26 = vrot.slane %v2093_v30, %v3803_v33  ;;  %v2117_v36 = vrot.slane %v2109_v31, %v3803_v33  ;;  %v2108_v13 = vrot.slane %v2094_v32, %v3803_v33  ;;  %v2124_v12 = vrot.slane %v2110_v25, %v3803_v33 }
 0x6fb   : > { %v2125_v37 = vcombine.low %v2101_v26, %v2117_v36  ;;  %v2126_v38 = vcombine.high %v2101_v26, %v2117_v36  ;;  %v4025_v39 = vcombine.low %v2108_v13, %v2124_v12  ;;  %v4027_v40 = vcombine.high %v2108_v13, %v2124_v12 }
 0x6fd   : > { %v2129_v41 = vpack.c.bf16 %v2125_v37, %v2125_v37  ;;  %v2130_v42 = vpack.c.bf16 %v2126_v38, %v2126_v38  ;;  %v2131_v31 = vpack.c.bf16 %v4025_v39, %v4025_v39  ;;  %v2132_v32 = vpack.c.bf16 %v4027_v40, %v4027_v40 }
 0x6ff   : > { %v2289_v43 = vsel %vm1059_vm2, %v2129_v41, 0  ;;  %v2335_v44 = vsel %vm1059_vm2, %v2130_v42, 0  ;;  %v2381_v12 = vsel %vm1059_vm2, %v2131_v31, 0  ;;  %v2427_v37 = vsel %vm1059_vm2, %v2132_v32, 0 }
 0x700   : > { %3473 = vmatpush3.bf16.xpose.msra.mxu0 %v2289_v43  ;;  %3479 = vmatpush3.bf16.xpose.msra.mxu1 %v2335_v44 }
 0x701   : > { %3484 = vmatprep.subr.bf16.mxu0 %v3632_v1  ;;  %3490 = vmatprep.subr.bf16.mxu1 %v3632_v1 }
 0x743   : > { %v1760_v46 = vpop.f32.mrb[20].mxu0 }
 0x744   : > { %v1761_v34 = vadd.f32 %v3283_v45, %v1760_v46  ;;  %v3462_v47 = vpop.f32.mrb[21].mxu0 }
 0x745   : > { %v1763_v35 = vpop.f32.mrb[22].mxu0 }
 0x746   : > { %1837 = vrot.lane.b32.xlu0 %v1761_v34, %s3637_s23  ;;  %1834 = vrot.lane.b32.xlu1 %v1761_v34, %s3635_s20  ;;  %v3463_v48 = vpop.f32.mrb[23].mxu0  ;;  %s533_s23 = scalar_lea.vmem %s4246_s16, %s3750_s27 }
 0x74a   : > { %1840 = vrot.lane.b32.xlu1 %v1761_v34, %s3634_s19 }
 0x7b8   : > { %v1838_v49 = vpop.permute.xlu0 %1837  ;;  %v1835_v50 = vpop.permute.xlu1 %1834 }
 0x7b9   : > { %v1843_v51 = vcombine.low %v1761_v34, %v1838_v49  ;;  %v1844_v53 = vcombine.high %v1761_v34, %v1838_v49 }
 0x7bb   : > { %v1851_v3 = vrot.slane %v1843_v51, %v3793_v23  ;;  %v1858_v58 = vrot.slane %v1844_v53, %v3793_v23 }
 0x7bc   : > { %v1841_v54 = vpop.permute.xlu1 %1840 }
 0x7bd   : > { %v1859_v55 = vcombine.low %v1835_v50, %v1841_v54  ;;  %v1860_v56 = vcombine.high %v1835_v50, %v1841_v54 }
 0x7bf   : > { %v1867_v59 = vrot.slane %v1859_v55, %v3793_v23  ;;  %v1874_v62 = vrot.slane %v1860_v56, %v3793_v23 }
 0x7c1   : > { %v1875_v63 = vcombine.low %v1851_v3, %v1867_v59  ;;  %v1876_v2 = vcombine.high %v1851_v3, %v1867_v59  ;;  %v1891_v4 = vcombine.low %v1858_v58, %v1874_v62  ;;  %v1892_v5 = vcombine.high %v1858_v58, %v1874_v62 }
 0x7c3   : > { %v1883_v6 = vrot.slane %v1875_v63, %v3803_v33  ;;  %v1890_v8 = vrot.slane %v1876_v2, %v3803_v33  ;;  %v1899_v9 = vrot.slane %v1891_v4, %v3803_v33  ;;  %v1906_v10 = vrot.slane %v1892_v5, %v3803_v33 }
 0x7c5   : > { %v1911_v14 = vcombine.low %v1883_v6, %v1890_v8  ;;  %v3291_v15 = vcombine.high %v1883_v6, %v1890_v8  ;;  %v1927_v16 = vcombine.low %v1899_v9, %v1906_v10  ;;  %v3292_v17 = vcombine.high %v1899_v9, %v1906_v10 }
 0x7c7   : > { %v1918_v18 = vrot.slane %v1911_v14, %v3793_v23  ;;  %v1926_v19 = vrot.slane %v3291_v15, %v3793_v23  ;;  %v1934_v20 = vrot.slane %v1927_v16, %v3793_v23  ;;  %v1942_v21 = vrot.slane %v3292_v17, %v3793_v23 }
 0x7c9   : > { %v1943_v22 = vcombine.low %v1918_v18, %v1926_v19  ;;  %v1959_v24 = vcombine.low %v1934_v20, %v1942_v21  ;;  %v1944_v27 = vcombine.high %v1918_v18, %v1926_v19  ;;  %v1960_v11 = vcombine.high %v1934_v20, %v1942_v21 }
 0x7cb   : > { %v1951_v7 = vrot.slane %v1943_v22, %v3803_v33  ;;  %v1967_v28 = vrot.slane %v1959_v24, %v3803_v33  ;;  %v1958_v36 = vrot.slane %v1944_v27, %v3803_v33  ;;  %v1974_v13 = vrot.slane %v1960_v11, %v3803_v33 }
 0x7cd   : > { %v1975_v29 = vcombine.low %v1951_v7, %v1967_v28  ;;  %v1976_v30 = vcombine.high %v1951_v7, %v1967_v28  ;;  %v1977_v38 = vcombine.low %v1958_v36, %v1974_v13  ;;  %v1978_v39 = vcombine.high %v1958_v36, %v1974_v13 }
 0x7cf   : > { %v1979_v25 = vpack.c.bf16 %v1975_v29, %v1975_v29  ;;  %v1980_v26 = vpack.c.bf16 %v1976_v30, %v1976_v30  ;;  %v1981_v40 = vpack.c.bf16 %v1977_v38, %v1977_v38  ;;  %v1982_v41 = vpack.c.bf16 %v1978_v39, %v1978_v39 }
 0x7d1   : > { %3475 = vmatmul.mubr.msk.bf16.vlgmr.msra.gmra.mrb[24].mxu0 %vm1059_vm2, %v1979_v25  ;;  %3481 = vmatmul.mubr.msk.bf16.vlgmr.msra.gmra.mrb[24].mxu1 %vm1059_vm2, %v1980_v26 }
 0x7d2   : > { %3485 = vmatpush3.bf16.xpose.msra.mxu0 %v2381_v12  ;;  %3491 = vmatpush3.bf16.xpose.msra.mxu1 %v2427_v37 }
 0x7d3   : > { %3486 = vmatprep.mubr.msk.bf16.mxu0 %vm3633_vm0, %v3632_v1  ;;  %3492 = vmatprep.mubr.msk.bf16.mxu1 %vm3633_vm0, %v3632_v1 }
 0x7d4   : > { %3496 = vmatprep.subr.bf16.mxu0 %v3632_v1  ;;  %3502 = vmatprep.subr.bf16.mxu1 %v3632_v1 }
 0x7d9   : > { %3487 = vmatmul.mubr.msk.bf16.vlgmr.msra.gmra.mrb[28].mxu0 %vm1059_vm2, %v1981_v40  ;;  %3493 = vmatmul.mubr.msk.bf16.vlgmr.msra.gmra.mrb[28].mxu1 %vm1059_vm2, %v1982_v41 }
 0x7da   : > { %3498 = vmatprep.mubr.msk.bf16.mxu0 %vm3633_vm0, %v3632_v1  ;;  %3504 = vmatprep.mubr.msk.bf16.mxu1 %vm3633_vm0, %v3632_v1 }
 0x8a4   : > { %v2325_v42 = vpop.f32.mrb[24].mxu0  ;;  %v2371_v43 = vpop.f32.mrb[24].mxu1 }
 0x8a5   : > { %v3476_v44 = vpop.f32.mrb[25].mxu0  ;;  %v3482_v45 = vpop.f32.mrb[25].mxu1  ;;  %v2472_v46 = vsel %vm1059_vm2, %v2371_v43, -inf  ;;  %v2469_v34 = vsel %vm1059_vm2, %v2325_v42, -inf }
 0x8a6   : > { %2473 = vmax.xlane.f32.xlu1 %v2472_v46  ;;  %v2374_v47 = vpop.f32.mrb[26].mxu1  ;;  %2470 = vmax.xlane.f32.xlu0 %v2469_v34  ;;  %v2328_v35 = vpop.f32.mrb[26].mxu0 }
 0x8a7   : > { %v3477_v48 = vpop.f32.mrb[27].mxu0  ;;  %v3483_v49 = vpop.f32.mrb[27].mxu1 }
 0x8ac   : > { %v2417_v50 = vpop.f32.mrb[28].mxu0  ;;  %v2463_v51 = vpop.f32.mrb[28].mxu1 }
 0x8ad   : > { %v3488_v53 = vpop.f32.mrb[29].mxu0  ;;  %v3494_v54 = vpop.f32.mrb[29].mxu1  ;;  %v2475_v55 = vsel %vm1059_vm2, %v2417_v50, -inf  ;;  %v2478_v62 = vsel %vm1059_vm2, %v2463_v51, -inf }
 0x8ae   : > { %v2466_v56 = vpop.f32.mrb[30].mxu1  ;;  %2476 = vmax.xlane.f32.xlu0 %v2475_v55  ;;  %v2420_v3 = vpop.f32.mrb[30].mxu0 }
 0x8af   : > { %v3489_v58 = vpop.f32.mrb[31].mxu0  ;;  %v3495_v59 = vpop.f32.mrb[31].mxu1 }
 0x8b2   : > { %2479 = vmax.xlane.f32.xlu0 %v2478_v62 }
 0x8b7   : > { %2133 = vrot.lane.b32.xlu1 %v3987_v57, %s3636_s22 }
 0x933   : > { %v2474_v63 = vpop.xlane.xlu1 %2473  ;;  %v2471_v2 = vpop.xlane.xlu0 %2470 }
 0x934   : > { %v2482_v4 = vsub.f32 %v2371_v43, %v2474_v63  ;;  %v2481_v5 = vsub.f32 %v2325_v42, %v2471_v2 }
 0x936   : > { %v2487_v6 = vmul.f32 1.442695, %v2482_v4  ;;  %v2485_v8 = vmul.f32 1.442695, %v2481_v5 }
 0x938   : > { %3608 = vpow2.f32 %v2487_v6 }
 0x939   : > { %3610 = vpow2.f32 %v2485_v8 }
 0x93b   : > { %v2477_v57 = vpop.xlane.xlu0 %2476 }
 0x93c   : > { %v2483_v16 = vsub.f32 %v2417_v50, %v2477_v57 }
 0x93e   : > { %v2489_v18 = vmul.f32 1.442695, %v2483_v16 }
 0x93f   : > { %v2480_v17 = vpop.xlane.xlu0 %2479 }
 0x940   : > { %v2484_v19 = vsub.f32 %v2463_v51, %v2480_v17  ;;  %3612 = vpow2.f32 %v2489_v18 }
 0x942   : > { %v4081_v9 = vpop.eup %3608  ;;  %v2491_v20 = vmul.f32 1.442695, %v2484_v19 }
 0x943   : > { %v4083_v10 = vpop.eup %3610  ;;  %v2496_v14 = vsel %vm1059_vm2, %v4081_v9, 0.0 }
 0x944   : > { %v2493_v15 = vsel %vm1059_vm2, %v4083_v10, 0.0  ;;  %2497 = vadd.xlane.f32.xlu0 %v2496_v14  ;;  %3614 = vpow2.f32 %v2491_v20 }
 0x945   : > { %2494 = vadd.xlane.f32.xlu1 %v2493_v15 }
 0x94a   : > { %v4095_v21 = vpop.eup %3612 }
 0x94b   : > { %v2499_v22 = vsel %vm1059_vm2, %v4095_v21, 0.0 }
 0x956   : > { %2137 = vrot.lane.b32.xlu1 %v3997_v61, %s3636_s22  ;;  %v4099_v61 = vpop.eup %3614 }
 0x95a   : > { %2139 = vrot.lane.b32.xlu1 %v4003_v0, %s3636_s22  ;;  %2135 = vrot.lane.b32.xlu0 %v3995_v60, %s3636_s22  ;;  %v2502_v0 = vsel %vm1059_vm2, %v4099_v61, 0.0  ;;  %v2134_v60 = vpop.permute.xlu1 %2133 }
 0x979   : > { %2500 = vadd.xlane.f32.xlu0 %v2499_v22 }
 0x97e   : > { %2503 = vadd.xlane.f32.xlu1 %v2502_v0 }
 0x9d1   : > { %v2498_v27 = vpop.xlane.xlu0 %2497 }
 0x9d2   : > { %v2495_v24 = vpop.xlane.xlu1 %2494  ;;  %3616 = vrcp.f32 %v2498_v27 }
 0x9d3   : > { %3618 = vrcp.f32 %v2495_v24 }
 0x9d5   : > { %v2136_v29 = vpop.permute.xlu0 %2135 }
 0x9d6   : > { %v2138_v11 = vpop.permute.xlu1 %2137 }
 0x9d7   : > { %v2145_v7 = vcombine.low %v2134_v60, %v2138_v11  ;;  %v2146_v28 = vcombine.high %v2134_v60, %v2138_v11 }
 0x9d9   : > { %v2153_v25 = vrot.slane %v2145_v7, %v3793_v23  ;;  %v2160_v26 = vrot.slane %v2146_v28, %v3793_v23 }
 0x9da   : > { %v2140_v30 = vpop.permute.xlu1 %2139 }
 0x9db   : > { %v2161_v31 = vcombine.low %v2136_v29, %v2140_v30  ;;  %v2162_v32 = vcombine.high %v2136_v29, %v2140_v30 }
 0x9dc   : > { %v3617_v55 = vpop.eup %3616 }
 0x9dd   : > { %v2169_v36 = vrot.slane %v2161_v31, %v3793_v23  ;;  %v2176_v13 = vrot.slane %v2162_v32, %v3793_v23  ;;  %v3619_v62 = vpop.eup %3618  ;;  %v2510_v8 = vmul.f32 %v3617_v55, %v4081_v9 }
 0x9de   : > { %v2509_v6 = vmul.f32 %v3619_v62, %v4083_v10 }
 0x9df   : > { %v2177_v12 = vcombine.low %v2153_v25, %v2169_v36  ;;  %v2178_v37 = vcombine.high %v2153_v25, %v2169_v36  ;;  %v2193_v38 = vcombine.low %v2160_v26, %v2176_v13  ;;  %v2194_v39 = vcombine.high %v2160_v26, %v2176_v13 }
 0x9e0   : > { %v2513_v19 = vpack.c.bf16 %v2509_v6, %v2509_v6  ;;  %v2514_v20 = vpack.c.bf16 %v2510_v8, %v2510_v8 }
 0x9e1   : > { %v2185_v40 = vrot.slane %v2177_v12, %v3803_v33  ;;  %v2192_v41 = vrot.slane %v2178_v37, %v3803_v33  ;;  %v2201_v42 = vrot.slane %v2193_v38, %v3803_v33  ;;  %v2208_v43 = vrot.slane %v2194_v39, %v3803_v33 }
 0x9e3   : > { %v2213_v44 = vcombine.low %v2185_v40, %v2192_v41  ;;  %v3295_v45 = vcombine.high %v2185_v40, %v2192_v41  ;;  %v2229_v46 = vcombine.low %v2201_v42, %v2208_v43  ;;  %v3296_v34 = vcombine.high %v2201_v42, %v2208_v43 }
 0x9e5   : > { %v2220_v47 = vrot.slane %v2213_v44, %v3793_v23  ;;  %v2228_v35 = vrot.slane %v3295_v45, %v3793_v23  ;;  %v2236_v48 = vrot.slane %v2229_v46, %v3793_v23  ;;  %v2244_v49 = vrot.slane %v3296_v34, %v3793_v23 }
 0x9e7   : > { %v2245_v50 = vcombine.low %v2220_v47, %v2228_v35  ;;  %v2261_v51 = vcombine.low %v2236_v48, %v2244_v49  ;;  %v2246_v53 = vcombine.high %v2220_v47, %v2228_v35  ;;  %v2262_v54 = vcombine.high %v2236_v48, %v2244_v49  ;;  %v3584_v48 = vld [vmem:[%s4240_s10] sm:$0xff]  }
 0x9e9   : > { %v2253_v56 = vrot.slane %v2245_v50, %v3803_v33  ;;  %v2269_v3 = vrot.slane %v2261_v51, %v3803_v33  ;;  %v2260_v58 = vrot.slane %v2246_v53, %v3803_v33  ;;  %v2276_v59 = vrot.slane %v2262_v54, %v3803_v33 }
 0x9eb   : > { %v2277_v63 = vcombine.low %v2253_v56, %v2269_v3  ;;  %v2278_v2 = vcombine.high %v2253_v56, %v2269_v3  ;;  %v2279_v4 = vcombine.low %v2260_v58, %v2276_v59  ;;  %v2280_v5 = vcombine.high %v2260_v58, %v2276_v59  ;;  %v3585_v58 = vld [vmem:[%s4240_s10 + $0x8] sm:$0xff]  }
 0x9ed   : > { %v2281_v14 = vpack.c.bf16 %v2277_v63, %v2277_v63  ;;  %v2282_v15 = vpack.c.bf16 %v2278_v2, %v2278_v2  ;;  %v2283_v17 = vpack.c.bf16 %v2279_v4, %v2279_v4  ;;  %v2284_v18 = vpack.c.bf16 %v2280_v5, %v2280_v5 }
 0x9ef   : > { %v2521_v57 = vsel %vm1295_vm3, %v2281_v14, 0  ;;  %v2567_v16 = vsel %vm1295_vm3, %v2282_v15, 0  ;;  %v2613_v9 = vsel %vm1295_vm3, %v2283_v17, 0  ;;  %v2659_v10 = vsel %vm1295_vm3, %v2284_v18, 0 }
 0x9f0   : > { %3497 = vmatpush3.bf16.msra.mxu0 %v2521_v57  ;;  %3503 = vmatpush3.bf16.msra.mxu1 %v2567_v16 }
 0x9f1   : > { %3508 = vmatprep.subr.bf16.mxu0 %v3632_v1  ;;  %3514 = vmatprep.subr.bf16.mxu1 %v3632_v1 }
 0x9f3   : > { %3499 = vmatmul.mubr.msk.bf16.vlgmr.msra.gmra.mrb[32].mxu0 %vm1059_vm2, %v2513_v19  ;;  %3505 = vmatmul.mubr.msk.bf16.vlgmr.msra.gmra.mrb[32].mxu1 %vm1059_vm2, %v2514_v20 }
 0x9f4   : > { %3509 = vmatpush3.bf16.msra.mxu0 %v2613_v9  ;;  %3515 = vmatpush3.bf16.msra.mxu1 %v2659_v10 }
 0x9f5   : > { %3510 = vmatprep.mubr.msk.bf16.mxu0 %vm3633_vm0, %v3632_v1  ;;  %3516 = vmatprep.mubr.msk.bf16.mxu1 %vm3633_vm0, %v3632_v1 }
 0x9f6   : > { %3520 = vmatprep.subr.bf16.mxu0 %v3632_v1  ;;  %3528 = vmatprep.subr.bf16.mxu1 %v3632_v1 }
 0xa06   : > { %v2501_v22 = vpop.xlane.xlu0 %2500 }
 0xa07   : > { %3620 = vrcp.f32 %v2501_v22 }
 0xa0b   : > { %v2504_v0 = vpop.xlane.xlu1 %2503 }
 0xa0c   : > { %3622 = vrcp.f32 %v2504_v0 }
 0xa11   : > { %v3621_v60 = vpop.eup %3620 }
 0xa12   : > { %v2511_v24 = vmul.f32 %v3621_v60, %v4095_v21 }
 0xa14   : > { %v2515_v27 = vpack.c.bf16 %v2511_v24, %v2511_v24 }
 0xa16   : > { %v3623_v11 = vpop.eup %3622  ;;  %3511 = vmatmul.mubr.msk.bf16.vlgmr.msra.gmra.mrb[36].mxu0 %vm1059_vm2, %v2515_v27 }
 0xa17   : > { %v2512_v7 = vmul.f32 %v3623_v11, %v4099_v61  ;;  %3524 = vmatprep.mubr.msk.bf16.mxu0 %vm3633_vm0, %v3632_v1  ;;  %3521 = vmatpush3.bf16.msra.mxu0 %v3584_v48 }
 0xa18   : > { %3522 = vmatprep.subr.bf16.mxu0 %v3632_v1 }
 0xa19   : > { %v2516_v28 = vpack.c.bf16 %v2512_v7, %v2512_v7 }
 0xa1b   : > { %3517 = vmatmul.mubr.msk.bf16.vlgmr.msra.gmra.mrb[36].mxu1 %vm1059_vm2, %v2516_v28  ;;  %3523 = vmatpush3.bf16.msra.mxu0 %v3585_v58  ;;  %v3586_v28 = vld [vmem:[%s4242_s12] sm:$0xff]  }
 0xa1c   : > { %3532 = vmatprep.mubr.msk.bf16.mxu1 %vm3633_vm0, %v3632_v1  ;;  %3536 = vmatprep.subr.bf16.mxu0 %v3632_v1 }
 0xa1d   : > { %3529 = vmatpush3.bf16.msra.mxu1 %v3586_v28 }
 0xa1e   : > { %3530 = vmatprep.subr.bf16.mxu1 %v3632_v1 }
 0xac6   : > { %v2557_v29 = vpop.f32.mrb[32].mxu0  ;;  %v2603_v30 = vpop.f32.mrb[32].mxu1 }
 0xac7   : > { %v3500_v31 = vpop.f32.mrb[33].mxu0  ;;  %v3506_v32 = vpop.f32.mrb[33].mxu1 }
 0xac8   : > { %v2560_v21 = vpop.f32.mrb[34].mxu0  ;;  %v2606_v25 = vpop.f32.mrb[34].mxu1  ;;  %v3310_v31 = vld [vmem:[%s4241_s11] ss:$0 sm:$0xff] }
 0xac9   : > { %v3501_v26 = vpop.f32.mrb[35].mxu0  ;;  %v3507_v36 = vpop.f32.mrb[35].mxu1 }
 0xae9   : > { %v2649_v13 = vpop.f32.mrb[36].mxu0 }
 0xaea   : > { %v2701_v12 = vcombine.low %v2557_v29, %v2649_v13  ;;  %v2702_v61 = vcombine.high %v2557_v29, %v2649_v13  ;;  %v3512_v37 = vpop.f32.mrb[37].mxu0  ;;  %v3587_v29 = vld [vmem:[%s4242_s12 + $0x8] sm:$0xff]  }
 0xaeb   : > { %v2652_v38 = vpop.f32.mrb[38].mxu0  ;;  %3531 = vmatpush3.bf16.msra.mxu1 %v3587_v29 }
 0xaec   : > { %v3513_v39 = vpop.f32.mrb[39].mxu0  ;;  %v2709_v45 = vrot.slane %v2701_v12, %v3793_v23  ;;  %v2716_v46 = vrot.slane %v2702_v61, %v3793_v23  ;;  %3542 = vmatprep.subr.bf16.mxu1 %v3632_v1  ;;  %v3588_v12 = vld [vmem:[%s4244_s14] sm:$0xff]  }
 0xaee   : > { %v2695_v40 = vpop.f32.mrb[36].mxu1 }
 0xaef   : > { %v2717_v41 = vcombine.low %v2603_v30, %v2695_v40  ;;  %v2718_v42 = vcombine.high %v2603_v30, %v2695_v40  ;;  %v3518_v43 = vpop.f32.mrb[37].mxu1 }
 0xaf0   : > { %v2698_v44 = vpop.f32.mrb[38].mxu1 }
 0xaf1   : > { %v2725_v34 = vrot.slane %v2717_v41, %v3793_v23  ;;  %v2732_v47 = vrot.slane %v2718_v42, %v3793_v23  ;;  %v3519_v35 = vpop.f32.mrb[39].mxu1  ;;  %v3589_v44 = vld [vmem:[%s4242_s12 + $0x10] sm:$0xff]  }
 0xaf3   : > { %v2733_v49 = vcombine.low %v2709_v45, %v2725_v34  ;;  %v2734_v50 = vcombine.high %v2709_v45, %v2725_v34  ;;  %v2749_v51 = vcombine.low %v2716_v46, %v2732_v47  ;;  %v2750_v53 = vcombine.high %v2716_v46, %v2732_v47  ;;  %v3590_v45 = vld [vmem:[%s4242_s12 + $0x18] sm:$0xff]   ;;  %v3317_v34 = vld [vmem:[%s4245_s15] ss:$0 sm:$0xff] }
 0xaf5   : > { %v2741_v54 = vrot.slane %v2733_v49, %v3803_v33  ;;  %v2748_v55 = vrot.slane %v2734_v50, %v3803_v33  ;;  %v2757_v56 = vrot.slane %v2749_v51, %v3803_v33  ;;  %v2764_v3 = vrot.slane %v2750_v53, %v3803_v33  ;;  %v3323_v53 = vld [vmem:[%s4243_s13 + $0x1] ss:$0 sm:$0xff] }
 0xaf7   : > { %v2769_v59 = vcombine.low %v2741_v54, %v2748_v55  ;;  %v3305_v62 = vcombine.high %v2741_v54, %v2748_v55  ;;  %v2785_v63 = vcombine.low %v2757_v56, %v2764_v3  ;;  %v3306_v2 = vcombine.high %v2757_v56, %v2764_v3 }
 0xaf9   : > { %v2776_v4 = vrot.slane %v2769_v59, %v3793_v23  ;;  %v2784_v5 = vrot.slane %v3305_v62, %v3793_v23  ;;  %v2792_v6 = vrot.slane %v2785_v63, %v3793_v23  ;;  %v2800_v8 = vrot.slane %v3306_v2, %v3793_v23 }
 0xafb   : > { %v2802_v14 = vcombine.high %v2776_v4, %v2784_v5  ;;  %v2818_v15 = vcombine.high %v2792_v6, %v2800_v8  ;;  %v2801_v57 = vcombine.low %v2776_v4, %v2784_v5  ;;  %v2817_v16 = vcombine.low %v2792_v6, %v2800_v8  ;;  %v3332_v4 = vld [vmem:[%s4245_s15 + $0x1] ss:$0 sm:$0xff] }
 0xafd   : > { %v2816_v17 = vrot.slane %v2802_v14, %v3803_v33  ;;  %v2832_v18 = vrot.slane %v2818_v15, %v3803_v33  ;;  %v2809_v19 = vrot.slane %v2801_v57, %v3803_v33  ;;  %v2825_v20 = vrot.slane %v2817_v16, %v3803_v33 }
 0xaff   : > { %v2835_v9 = vcombine.low %v2816_v17, %v2832_v18  ;;  %v2834_v10 = vcombine.high %v2809_v19, %v2825_v20  ;;  %v2836_v22 = vcombine.high %v2816_v17, %v2832_v18  ;;  %v2833_v0 = vcombine.low %v2809_v19, %v2825_v20 }
 0xb01   : > { %2842 = vrot.lane.b32.xlu1 %v2835_v9, %s3641_s30  ;;  %2838 = vrot.lane.b32.xlu0 %v2834_v10, %s3642_s0 }
 0xb05   : > { %2846 = vrot.lane.b32.xlu0 %v2836_v22, %s4250_s25 }
 0xb73   : > { %v2839_v23 = vpop.permute.xlu0 %2838  ;;  %v2843_v60 = vpop.permute.xlu1 %2842 }
 0xb74   : > { %v2849_v24 = vsel %vm1059_vm2, %v2833_v0, %v2839_v23 }
 0xb75   : > { %v2850_v11 = vsel %vm1626_vm4, %v2849_v24, %v2843_v60 }
 0xb77   : > { %v2847_v27 = vpop.permute.xlu0 %2846 }
 0xb78   : > { %v2851_v7 = vsel %vm1628_vm5, %v2850_v11, %v2847_v27 }
 0xb79   : > { %v2856_v33 = vpack.c.bf16 %v2851_v7, %v2851_v7 }
 0xb7b   : > { %3525 = vmatmul.mubr.msk.bf16.vlgmr.msra.gmra.mrb[40].mxu0 %vm561_vm1, %v2856_v33 }
 0xb7c   : > { %3538 = vmatprep.mubr.msk.bf16.mxu0 %vm3633_vm0, %v3632_v1  ;;  %3537 = vmatpush3.bf16.msra.mxu0 %v3588_v12 }
 0xb7d   : > { %3550 = vmatprep.subr.bf16.mxu0 %v3632_v1 }
 0xc4e   : > { %v2906_v30 = vpop.f32.mrb[40].mxu0 }
 0xc4f   : > { %v2912_v32 = vadd.f32 %v2906_v30, %v3977_v52  ;;  %v3526_v21 = vpop.f32.mrb[41].mxu0  ;;  %v3311_v52 = vld [vmem:[%s4243_s13] ss:$0 sm:$0xff] }
 0xc50   : > { %v2909_v25 = vpop.f32.mrb[42].mxu0 }
 0xc51   : > { %v2920_v26 = vadd.f32 %v3310_v31, %v2912_v32  ;;  %v3527_v36 = vpop.f32.mrb[43].mxu0 }
 0xc53   : > { %v2925_v13 = vpack.c.bf16 %v2920_v26, %v2920_v26 }
 0xc55   : > { %3533 = vmatmul.mubr.msk.bf16.vlgmr.msra.gmra.mrb[40].mxu1 %vm561_vm1, %v2925_v13 }
 0xc56   : > { %3546 = vmatprep.mubr.msk.bf16.mxu1 %vm3633_vm0, %v3632_v1  ;;  %3543 = vmatpush3.bf16.msra.mxu1 %v3589_v44 }
 0xc57   : > { %3544 = vmatprep.subr.bf16.mxu1 %v3632_v1 }
 0xc5a   : > { %3545 = vmatpush3.bf16.msra.mxu1 %v3590_v45 }
 0xd28   : > { %v2982_v61 = vpop.f32.mrb[40].mxu1 }
 0xd29   : > { %v2983_v37 = vadd.f32 %v3311_v52, %v2982_v61  ;;  %v3534_v38 = vpop.f32.mrb[41].mxu1 }
 0xd2a   : > { %v2985_v39 = vpop.f32.mrb[42].mxu1 }
 0xd2b   : > { %v2988_v40 = vmul.f32 0.01, %v2983_v37  ;;  %v3535_v41 = vpop.f32.mrb[43].mxu1 }
 0xd2d   : > { %v2989_v42 = vmax.f32 %v2983_v37, %v2988_v40 }
 0xd2f   : > { %v2992_v43 = vpack.c.bf16 %v2989_v42, %v2989_v42 }
 0xd31   : > { %3539 = vmatmul.mubr.msk.bf16.vlgmr.msra.gmra.mrb[44].mxu0 %vm1626_vm4, %v2992_v43 }
 0xd32   : > { %3552 = vmatprep.mubr.msk.bf16.mxu0 %vm3633_vm0, %v3632_v1  ;;  %v3591_v1 = vld [vmem:[%s4244_s14 + $0x8] sm:$0xff]  }
 0xd33   : > { %3551 = vmatpush3.bf16.msra.mxu0 %v3591_v1 }
 0xe04   : > { %v3036_v46 = vpop.f32.mrb[44].mxu0 }
 0xe05   : > { %v3042_v47 = vadd.f32 %v3036_v46, %v2920_v26  ;;  %v3540_v35 = vpop.f32.mrb[45].mxu0 }
 0xe06   : > { %v3039_v48 = vpop.f32.mrb[46].mxu0 }
 0xe07   : > { %v3050_v49 = vadd.f32 %v3317_v34, %v3042_v47  ;;  %v3541_v50 = vpop.f32.mrb[47].mxu0 }
 0xe09   : > { %v3056_v51 = vpack.c.bf16 %v3050_v49, %v3050_v49 }
 0xe0b   : > { %3547 = vmatmul.mubr.msk.bf16.vlgmr.msra.gmra.mrb[44].mxu1 %vm561_vm1, %v3056_v51 }
 0xede   : > { %v3114_v54 = vpop.f32.mrb[44].mxu1 }
 0xedf   : > { %v3115_v55 = vadd.f32 %v3323_v53, %v3114_v54  ;;  %v3548_v56 = vpop.f32.mrb[45].mxu1 }
 0xee0   : > { %v3117_v3 = vpop.f32.mrb[46].mxu1 }
 0xee1   : > { %v3120_v58 = vmul.f32 0.01, %v3115_v55  ;;  %v3549_v59 = vpop.f32.mrb[47].mxu1 }
 0xee3   : > { %v3121_v62 = vmax.f32 %v3115_v55, %v3120_v58 }
 0xee5   : > { %v3125_v63 = vpack.c.bf16 %v3121_v62, %v3121_v62 }
 0xee7   : > { %3553 = vmatmul.mubr.msk.bf16.vlgmr.msra.gmra.mrb[48].mxu0 %vm1626_vm4, %v3125_v63 }
 0xfba   : > { %v3169_v2 = vpop.f32.mrb[48].mxu0 }
 0xfbb   : > { %v3175_v5 = vadd.f32 %v3169_v2, %v3050_v49  ;;  %v3554_v6 = vpop.f32.mrb[49].mxu0 }
 0xfbc   : > { %v3172_v8 = vpop.f32.mrb[50].mxu0 }
 0xfbd   : > { %v3184_v14 = vadd.f32 %v3332_v4, %v3175_v5  ;;  %v3555_v15 = vpop.f32.mrb[51].mxu0 }
 0xfbf   : > { %3185 = vst.msk [vmem:[%s533_s23] sm:$0xff] %vm561_vm1, %v3184_v14 }
 0xfc0 PF: > { %s26_s21 = sadd.s32 1, %s3630_s21  }
 0xfc1   : > { %p23_p4 = scmp.ge.s32.totalorder %s26_s21, 4  }
 0xfc3   :  { %25 = sbr.rel (!%p23_p4) target bundleno = 2 (0x2), region = 121 }

</bundles_post_ra>
